<compile_context>
chip_gen: v6e
topology: v6e:2x2x1
jax: 0.10.0
libtpu: 0.0.40
codegen_flags: <defaults>
</compile_context>

<pallas_src>
import jax
import jax.numpy as jnp
from jax.experimental import pallas as pl
from jax.experimental.pallas import tpu as pltpu

LAYER_DIMS = [784, 512, 256, 128, 64, 10]
OUT_PAD = 128  # logits lane-padded 10 -> 128 for unmasked stores / MXU-aligned N


def _round_up(x, m):
    return ((x + m - 1) // m) * m


def _mlp_kernel(x_ref,
                w1_ref, b1_ref,
                w2_ref, b2_ref,
                w3_ref, b3_ref,
                w4_ref, b4_ref,
                w5_ref, b5_ref,
                o_ref):
    # Layer 1: cast the streamed f32 pixels to bf16 in-register (VPU) and hit
    # the MXU with bf16 operands + f32 accumulation.  Bias + ReLU stay f32.
    h = jnp.dot(x_ref[...].astype(w1_ref.dtype), w1_ref[...],
                preferred_element_type=jnp.float32)
    h = jnp.maximum(h + b1_ref[...], 0.0)
    # Layers 2-4: cast activations to the weight dtype (bf16) before each dot.
    for w_ref, b_ref in ((w2_ref, b2_ref), (w3_ref, b3_ref), (w4_ref, b4_ref)):
        h = jnp.dot(h.astype(w_ref.dtype), w_ref[...],
                    preferred_element_type=jnp.float32)
        h = jnp.maximum(h + b_ref[...], 0.0)
    # Layer 5: logits (lane-padded to 128; pad columns are exact zeros).
    o = jnp.dot(h.astype(w5_ref.dtype), w5_ref[...],
                preferred_element_type=jnp.float32) + b5_ref[...]
    o_ref[...] = o.astype(o_ref.dtype)


def mlp_forward(x_nchw, params, *, block_b=1024, compute_dtype=jnp.bfloat16):
    """x_nchw: (B, 1, 28, 28) float32.  params: list of (W=(in,out), b=(out,))."""
    B = x_nchw.shape[0]
    # Reshape only (no pad, no dtype cast): the kernel reads the f32 pixels
    # directly and converts to bf16 on the VPU, avoiding an extra HBM pass.
    x2d = x_nchw.reshape(B, LAYER_DIMS[0]).astype(jnp.float32)

    # Batch tile: multiple of 8 sublanes, up to block_b rows.
    tb = min(block_b, _round_up(B, 8))
    # Prefer >=2 grid steps (when the batch allows it) so the "parallel" batch
    # axis can shard across v7x's two TensorCores.
    if tb >= 16 and _round_up(B, tb) // tb < 2:
        tb = _round_up((tb + 1) // 2, 8)
    padded_b = _round_up(B, tb)
    if padded_b != B:
        x2d = jnp.pad(x2d, ((0, padded_b - B), (0, 0)))

    flat_args = [x2d]
    # x streams through the pipeline; K=784 equals the full array dim, so the
    # (8,128) block constraint is satisfied without padding.
    in_specs = [pl.BlockSpec((tb, LAYER_DIMS[0]), lambda i: (i, 0))]
    n_layers = len(params)
    for li, (w, b) in enumerate(params):
        if li == n_layers - 1:
            # Lane-dense output: zero-pad the last layer to 128 output lanes.
            w = jnp.pad(w, ((0, 0), (0, OUT_PAD - w.shape[1])))
            b = jnp.pad(b, ((0, OUT_PAD - b.shape[0]),))
        w = w.astype(compute_dtype)                 # bf16 weights (MXU fast path)
        b = b.reshape(1, -1).astype(jnp.float32)    # lane-aligned f32 bias row
        flat_args.extend([w, b])
        # Constant block index: fetched once, resident in VMEM across the grid.
        in_specs.append(pl.BlockSpec(w.shape, lambda i: (0, 0)))
        in_specs.append(pl.BlockSpec(b.shape, lambda i: (0, 0)))

    out = pl.pallas_call(
        _mlp_kernel,
        grid=(padded_b // tb,),
        out_shape=jax.ShapeDtypeStruct((padded_b, OUT_PAD), jnp.float32),
        in_specs=in_specs,
        out_specs=pl.BlockSpec((tb, OUT_PAD), lambda i: (i, 0)),
        compiler_params=pltpu.CompilerParams(
            dimension_semantics=("parallel",),   # shard batch tiles across TCs (v7x)
            vmem_limit_bytes=32 << 20,           # ~15 MiB @ tb=1024; safe on v7x's 64 MiB
        ),
    )(*flat_args)
    # Drop batch padding and the 118 zero lanes of output padding.
    return out[:B, :LAYER_DIMS[-1]]


def init_params(key):
    """Deterministic init mimicking torch.nn.Linear default (U[-1/sqrt(fan_in), +])."""
    params = []
    for i in range(len(LAYER_DIMS) - 1):
        fan_in, fan_out = LAYER_DIMS[i], LAYER_DIMS[i + 1]
        key, kw, kb = jax.random.split(key, 3)
        bound = 1.0 / jnp.sqrt(float(fan_in))
        w = jax.random.uniform(kw, (fan_in, fan_out), jnp.float32, -bound, bound)
        b = jax.random.uniform(kb, (fan_out,), jnp.float32, -bound, bound)
        params.append((w, b))
    return params


def reference_forward(x_nchw, params, compute_dtype=jnp.float32):
    """Pure-JAX reference; compute_dtype emulates the kernel's matmul precision."""
    h = x_nchw.reshape(x_nchw.shape[0], LAYER_DIMS[0]).astype(jnp.float32)
    for i, (w, b) in enumerate(params):
        h = jnp.dot(h.astype(compute_dtype), w.astype(compute_dtype),
                    preferred_element_type=jnp.float32) + b
        if i < len(params) - 1:
            h = jnp.maximum(h, 0.0)
    return h


if __name__ == "__main__":
    key = jax.random.PRNGKey(0)
    key, kx = jax.random.split(key)

    # Small deterministic input consistent with the module: (B=2, C=1, 28, 28)
    x = jax.random.normal(kx, (2, 1, 28, 28), jnp.float32)
    params = init_params(key)

    fwd = jax.jit(mlp_forward)
    out = jax.block_until_ready(fwd(x, params))
    assert out.shape == (2, 10), out.shape

    # Tight check against a reference using the same bf16-matmul / f32-acc math.
    ref_bf16 = reference_forward(x, params, compute_dtype=jnp.bfloat16)
    assert jnp.allclose(out, ref_bf16, atol=2e-3, rtol=2e-3), "mismatch vs bf16 reference"

    # Sanity check against the full-f32 torch semantics (loose: weights are bf16 by design).
    ref_f32 = reference_forward(x, params, compute_dtype=jnp.float32)
    assert jnp.allclose(out, ref_f32, atol=0.15, rtol=0.15), "mismatch vs f32 reference"

    print("KERNEL_OK")
</pallas_src>

<mosaic_0001>
module attributes {stable_mosaic.version = 11 : i64} {
  func.func @_mlp_kernel(%arg0: i32, %arg1: memref<8x784xf32, #tpu.memory_space<vmem>>, %arg2: memref<784x512xbf16, #tpu.memory_space<vmem>>, %arg3: memref<1x512xf32, #tpu.memory_space<vmem>>, %arg4: memref<512x256xbf16, #tpu.memory_space<vmem>>, %arg5: memref<1x256xf32, #tpu.memory_space<vmem>>, %arg6: memref<256x128xbf16, #tpu.memory_space<vmem>>, %arg7: memref<1x128xf32, #tpu.memory_space<vmem>>, %arg8: memref<128x64xbf16, #tpu.memory_space<vmem>>, %arg9: memref<1x64xf32, #tpu.memory_space<vmem>>, %arg10: memref<64x128xbf16, #tpu.memory_space<vmem>>, %arg11: memref<1x128xf32, #tpu.memory_space<vmem>>, %arg12: memref<8x128xf32, #tpu.memory_space<vmem>>) attributes {dimension_semantics = [#tpu.dimension_semantics<parallel>], iteration_bounds = array<i64: 1>, scalar_prefetch = 0 : i64, scratch_operands = 0 : i64, tpu.core_type = #tpu.core_type<tc>, window_params = [{transform_indices = @transform_0, window_bounds = array<i64: 8, 784>}, {pipeline_mode = #tpu.pipeline_mode<synchronous>, transform_indices = @transform_1, window_bounds = array<i64: 784, 512>}, {pipeline_mode = #tpu.pipeline_mode<synchronous>, transform_indices = @transform_2, window_bounds = array<i64: 1, 512>}, {pipeline_mode = #tpu.pipeline_mode<synchronous>, transform_indices = @transform_3, window_bounds = array<i64: 512, 256>}, {pipeline_mode = #tpu.pipeline_mode<synchronous>, transform_indices = @transform_4, window_bounds = array<i64: 1, 256>}, {pipeline_mode = #tpu.pipeline_mode<synchronous>, transform_indices = @transform_5, window_bounds = array<i64: 256, 128>}, {pipeline_mode = #tpu.pipeline_mode<synchronous>, transform_indices = @transform_6, window_bounds = array<i64: 1, 128>}, {pipeline_mode = #tpu.pipeline_mode<synchronous>, transform_indices = @transform_7, window_bounds = array<i64: 128, 64>}, {pipeline_mode = #tpu.pipeline_mode<synchronous>, transform_indices = @transform_8, window_bounds = array<i64: 1, 64>}, {pipeline_mode = #tpu.pipeline_mode<synchronous>, transform_indices = @transform_9, window_bounds = array<i64: 64, 128>}, {pipeline_mode = #tpu.pipeline_mode<synchronous>, transform_indices = @transform_10, window_bounds = array<i64: 1, 128>}, {transform_indices = @transform_11, window_bounds = array<i64: 8, 128>}]} {
    %c0 = arith.constant 0 : index
    %c0_0 = arith.constant 0 : index
    %0 = vector.load %arg1[%c0, %c0_0] : memref<8x784xf32, #tpu.memory_space<vmem>>, vector<8x784xf32>
    %1 = arith.truncf %0 : vector<8x784xf32> to vector<8x784xbf16>
    %c0_1 = arith.constant 0 : index
    %c0_2 = arith.constant 0 : index
    %2 = vector.load %arg2[%c0_1, %c0_2] : memref<784x512xbf16, #tpu.memory_space<vmem>>, vector<784x512xbf16>
    %cst = arith.constant dense<0.000000e+00> : vector<8x512xf32>
    %3 = tpu.matmul %1, %2, %cst {dimension_numbers = #tpu.dot_dimension_numbers<[1], [0], [0], [1], [0, 0, 1, 1], [], []>} : vector<8x784xbf16>, vector<784x512xbf16>, vector<8x512xf32> -> vector<8x512xf32>
    %c0_3 = arith.constant 0 : index
    %c0_4 = arith.constant 0 : index
    %4 = vector.load %arg3[%c0_3, %c0_4] : memref<1x512xf32, #tpu.memory_space<vmem>>, vector<1x512xf32>
    %5 = vector.broadcast %4 : vector<1x512xf32> to vector<8x512xf32>
    %6 = arith.addf %3, %5 : vector<8x512xf32>
    %cst_5 = arith.constant 0.000000e+00 : f32
    %7 = vector.broadcast %cst_5 : f32 to vector<8x512xf32>
    %8 = arith.maximumf %6, %7 : vector<8x512xf32>
    %9 = arith.truncf %8 : vector<8x512xf32> to vector<8x512xbf16>
    %c0_6 = arith.constant 0 : index
    %c0_7 = arith.constant 0 : index
    %10 = vector.load %arg4[%c0_6, %c0_7] : memref<512x256xbf16, #tpu.memory_space<vmem>>, vector<512x256xbf16>
    %cst_8 = arith.constant dense<0.000000e+00> : vector<8x256xf32>
    %11 = tpu.matmul %9, %10, %cst_8 {dimension_numbers = #tpu.dot_dimension_numbers<[1], [0], [0], [1], [0, 0, 1, 1], [], []>} : vector<8x512xbf16>, vector<512x256xbf16>, vector<8x256xf32> -> vector<8x256xf32>
    %c0_9 = arith.constant 0 : index
    %c0_10 = arith.constant 0 : index
    %12 = vector.load %arg5[%c0_9, %c0_10] : memref<1x256xf32, #tpu.memory_space<vmem>>, vector<1x256xf32>
    %13 = vector.broadcast %12 : vector<1x256xf32> to vector<8x256xf32>
    %14 = arith.addf %11, %13 : vector<8x256xf32>
    %cst_11 = arith.constant 0.000000e+00 : f32
    %15 = vector.broadcast %cst_11 : f32 to vector<8x256xf32>
    %16 = arith.maximumf %14, %15 : vector<8x256xf32>
    %17 = arith.truncf %16 : vector<8x256xf32> to vector<8x256xbf16>
    %c0_12 = arith.constant 0 : index
    %c0_13 = arith.constant 0 : index
    %18 = vector.load %arg6[%c0_12, %c0_13] : memref<256x128xbf16, #tpu.memory_space<vmem>>, vector<256x128xbf16>
    %cst_14 = arith.constant dense<0.000000e+00> : vector<8x128xf32>
    %19 = tpu.matmul %17, %18, %cst_14 {dimension_numbers = #tpu.dot_dimension_numbers<[1], [0], [0], [1], [0, 0, 1, 1], [], []>} : vector<8x256xbf16>, vector<256x128xbf16>, vector<8x128xf32> -> vector<8x128xf32>
    %c0_15 = arith.constant 0 : index
    %c0_16 = arith.constant 0 : index
    %20 = vector.load %arg7[%c0_15, %c0_16] : memref<1x128xf32, #tpu.memory_space<vmem>>, vector<1x128xf32>
    %21 = vector.broadcast %20 : vector<1x128xf32> to vector<8x128xf32>
    %22 = arith.addf %19, %21 : vector<8x128xf32>
    %cst_17 = arith.constant 0.000000e+00 : f32
    %23 = vector.broadcast %cst_17 : f32 to vector<8x128xf32>
    %24 = arith.maximumf %22, %23 : vector<8x128xf32>
    %25 = arith.truncf %24 : vector<8x128xf32> to vector<8x128xbf16>
    %c0_18 = arith.constant 0 : index
    %c0_19 = arith.constant 0 : index
    %26 = vector.load %arg8[%c0_18, %c0_19] : memref<128x64xbf16, #tpu.memory_space<vmem>>, vector<128x64xbf16>
    %cst_20 = arith.constant dense<0.000000e+00> : vector<8x64xf32>
    %27 = tpu.matmul %25, %26, %cst_20 {dimension_numbers = #tpu.dot_dimension_numbers<[1], [0], [0], [1], [0, 0, 1, 1], [], []>} : vector<8x128xbf16>, vector<128x64xbf16>, vector<8x64xf32> -> vector<8x64xf32>
    %c0_21 = arith.constant 0 : index
    %c0_22 = arith.constant 0 : index
    %28 = vector.load %arg9[%c0_21, %c0_22] : memref<1x64xf32, #tpu.memory_space<vmem>>, vector<1x64xf32>
    %29 = vector.broadcast %28 : vector<1x64xf32> to vector<8x64xf32>
    %30 = arith.addf %27, %29 : vector<8x64xf32>
    %cst_23 = arith.constant 0.000000e+00 : f32
    %31 = vector.broadcast %cst_23 : f32 to vector<8x64xf32>
    %32 = arith.maximumf %30, %31 : vector<8x64xf32>
    %33 = arith.truncf %32 : vector<8x64xf32> to vector<8x64xbf16>
    %c0_24 = arith.constant 0 : index
    %c0_25 = arith.constant 0 : index
    %34 = vector.load %arg10[%c0_24, %c0_25] : memref<64x128xbf16, #tpu.memory_space<vmem>>, vector<64x128xbf16>
    %cst_26 = arith.constant dense<0.000000e+00> : vector<8x128xf32>
    %35 = tpu.matmul %33, %34, %cst_26 {dimension_numbers = #tpu.dot_dimension_numbers<[1], [0], [0], [1], [0, 0, 1, 1], [], []>} : vector<8x64xbf16>, vector<64x128xbf16>, vector<8x128xf32> -> vector<8x128xf32>
    %c0_27 = arith.constant 0 : index
    %c0_28 = arith.constant 0 : index
    %36 = vector.load %arg11[%c0_27, %c0_28] : memref<1x128xf32, #tpu.memory_space<vmem>>, vector<1x128xf32>
    %37 = vector.broadcast %36 : vector<1x128xf32> to vector<8x128xf32>
    %38 = arith.addf %35, %37 : vector<8x128xf32>
    %c0_29 = arith.constant 0 : index
    %c0_30 = arith.constant 0 : index
    %39 = vector.load %arg12[%c0_29, %c0_30] : memref<8x128xf32, #tpu.memory_space<vmem>>, vector<8x128xf32>
    tpu.vector_store %arg12[%c0_29, %c0_30], %38 {strides = array<i32>} : memref<8x128xf32, #tpu.memory_space<vmem>>, vector<8x128xf32>,
    return
  }
  func.func @transform_0(%arg0: i32) -> (i32, i32) {
    %c0_i32 = arith.constant 0 : i32
    %c0_i32_0 = arith.constant 0 : i32
    return %arg0, %c0_i32 : i32, i32
  }
  func.func @transform_1(%arg0: i32) -> (i32, i32) {
    %c0_i32 = arith.constant 0 : i32
    %c0_i32_0 = arith.constant 0 : i32
    %c0_i32_1 = arith.constant 0 : i32
    return %c0_i32, %c0_i32_0 : i32, i32
  }
  func.func @transform_2(%arg0: i32) -> (i32, i32) {
    %c0_i32 = arith.constant 0 : i32
    %c0_i32_0 = arith.constant 0 : i32
    %c0_i32_1 = arith.constant 0 : i32
    return %c0_i32, %c0_i32_0 : i32, i32
  }
  func.func @transform_3(%arg0: i32) -> (i32, i32) {
    %c0_i32 = arith.constant 0 : i32
    %c0_i32_0 = arith.constant 0 : i32
    %c0_i32_1 = arith.constant 0 : i32
    return %c0_i32, %c0_i32_0 : i32, i32
  }
  func.func @transform_4(%arg0: i32) -> (i32, i32) {
    %c0_i32 = arith.constant 0 : i32
    %c0_i32_0 = arith.constant 0 : i32
    %c0_i32_1 = arith.constant 0 : i32
    return %c0_i32, %c0_i32_0 : i32, i32
  }
  func.func @transform_5(%arg0: i32) -> (i32, i32) {
    %c0_i32 = arith.constant 0 : i32
    %c0_i32_0 = arith.constant 0 : i32
    %c0_i32_1 = arith.constant 0 : i32
    return %c0_i32, %c0_i32_0 : i32, i32
  }
  func.func @transform_6(%arg0: i32) -> (i32, i32) {
    %c0_i32 = arith.constant 0 : i32
    %c0_i32_0 = arith.constant 0 : i32
    %c0_i32_1 = arith.constant 0 : i32
    return %c0_i32, %c0_i32_0 : i32, i32
  }
  func.func @transform_7(%arg0: i32) -> (i32, i32) {
    %c0_i32 = arith.constant 0 : i32
    %c0_i32_0 = arith.constant 0 : i32
    %c0_i32_1 = arith.constant 0 : i32
    return %c0_i32, %c0_i32_0 : i32, i32
  }
  func.func @transform_8(%arg0: i32) -> (i32, i32) {
    %c0_i32 = arith.constant 0 : i32
    %c0_i32_0 = arith.constant 0 : i32
    %c0_i32_1 = arith.constant 0 : i32
    return %c0_i32, %c0_i32_0 : i32, i32
  }
  func.func @transform_9(%arg0: i32) -> (i32, i32) {
    %c0_i32 = arith.constant 0 : i32
    %c0_i32_0 = arith.constant 0 : i32
    %c0_i32_1 = arith.constant 0 : i32
    return %c0_i32, %c0_i32_0 : i32, i32
  }
  func.func @transform_10(%arg0: i32) -> (i32, i32) {
    %c0_i32 = arith.constant 0 : i32
    %c0_i32_0 = arith.constant 0 : i32
    %c0_i32_1 = arith.constant 0 : i32
    return %c0_i32, %c0_i32_0 : i32, i32
  }
  func.func @transform_11(%arg0: i32) -> (i32, i32) {
    %c0_i32 = arith.constant 0 : i32
    %c0_i32_0 = arith.constant 0 : i32
    return %arg0, %c0_i32 : i32, i32
  }
}

</mosaic_0001>

<bundles_post_ra>
// kernel: mlp_forward.1
= control target key start
LH: loop header
LB: loop body
LE: loop exit
PB: predicated region body
PF: predicated region fallthrough
CT: control target
= control target key end

     0   :  { %vm1251_vm0 = vcmask 130048   ;;  %vm3236_vm1 = vmmov 0   ;;  %vm2402_vm2 = vcmask 523264   ;;  %s4260_s1 = inlined_call_operand.vmem [shape: bf16[784,512], index: 1, kind: input, shape index: {}]   ;;  %s4261_s0 = inlined_call_operand.vmem [shape: f32[8,784], index: 0, kind: input, shape index: {}]   ;;  %s4262_s3 = inlined_call_operand.vmem [shape: bf16[512,256], index: 3, kind: input, shape index: {}]   ;;  %s4263_s2 = inlined_call_operand.vmem [shape: f32[1,512], index: 2, kind: input, shape index: {}]   ;;  %s4264_s5 = inlined_call_operand.vmem [shape: bf16[256,128], index: 5, kind: input, shape index: {}]   ;;  %s4265_s7 = inlined_call_operand.vmem [shape: bf16[128,64], index: 7, kind: input, shape index: {}]   ;;  %s4266_s4 = inlined_call_operand.vmem [shape: f32[1,256], index: 4, kind: input, shape index: {}]   ;;  %s4267_s9 = inlined_call_operand.vmem [shape: bf16[64,128], index: 9, kind: input, shape index: {}]   ;;  %s4268_s6 = inlined_call_operand.vmem [shape: f32[1,128], index: 6, kind: input, shape index: {}]   ;;  %s4269_s8 = inlined_call_operand.vmem [shape: f32[1,64], index: 8, kind: input, shape index: {}]   ;;  %s4270_s10 = inlined_call_operand.vmem [shape: f32[1,128], index: 10, kind: input, shape index: {}]   ;;  %s4271_s11 = inlined_call_operand.vmem [shape: f32[8,128], index: 11, kind: output, shape index: {}]  }
   0x1   :  { %v2816_v0 = vld [vmem:[%s4260_s1 + $0xe4] ss:$16 sps:$4 sm:$0xff]   ;;  %v2820_v2 = vld [vmem:[%s4260_s1 + $0xe0] ss:$16 sps:$4 sm:$0xff]   ;;  %v40_v46 = vld [vmem:[%s4261_s0 + $0x8] sm:$0xff] }
   0x2   :  { %v2818_v1 = vld [vmem:[%s4260_s1 + $0x2e4] ss:$16 sps:$4 sm:$0xff]   ;;  %1255 = vmatprep.subr.bf16.mxu0 %v2816_v0  ;;  %v2821_v3 = vld [vmem:[%s4260_s1 + $0x2e0] ss:$16 sps:$4 sm:$0xff]   ;;  %v3444_v49 = vpack.c.bf16 %v40_v46, %v40_v46  ;;  %v42_v50 = vld [vmem:[%s4261_s0 + $0x18] sm:$0xff] }
   0x3   :  { %1296 = vmatprep.subr.bf16.mxu1 %v2818_v1  ;;  %v2822_v4 = vld [vmem:[%s4260_s1 + $0xc4] ss:$16 sps:$4 sm:$0xff]   ;;  %1256 = vmatpush1.bf16.msra.mxu0 %v2820_v2  ;;  %v2826_v6 = vld [vmem:[%s4260_s1 + $0xc0] ss:$16 sps:$4 sm:$0xff]   ;;  %v3452_v52 = vpack.c.bf16 %v42_v50, %v42_v50 }
   0x4   :  { %1297 = vmatpush1.bf16.msra.mxu1 %v2821_v3  ;;  %v2824_v5 = vld [vmem:[%s4260_s1 + $0x2c4] ss:$16 sps:$4 sm:$0xff]   ;;  %1257 = vmatprep.subr.bf16.mxu0 %v2822_v4  ;;  %v2827_v7 = vld [vmem:[%s4260_s1 + $0x2c0] ss:$16 sps:$4 sm:$0xff]  }
   0x5   :  { %1298 = vmatprep.subr.bf16.mxu1 %v2824_v5  ;;  %v2828_v8 = vld [vmem:[%s4260_s1 + $0xa4] ss:$16 sps:$4 sm:$0xff]   ;;  %v2832_v10 = vld [vmem:[%s4260_s1 + $0xa0] ss:$16 sps:$4 sm:$0xff]   ;;  %1287 = vmatprep.mubr.bf16.mxu0 %v3444_v49 }
   0x6   :  { %v2830_v9 = vld [vmem:[%s4260_s1 + $0x2a4] ss:$16 sps:$4 sm:$0xff]   ;;  %v2833_v11 = vld [vmem:[%s4260_s1 + $0x2a0] ss:$16 sps:$4 sm:$0xff]   ;;  %1328 = vmatprep.mubr.bf16.mxu1 %v3452_v52 }
   0x7   :  { %1258 = vmatpush1.bf16.msra.mxu0 %v2826_v6  ;;  %v2834_v12 = vld [vmem:[%s4260_s1 + $0x84] ss:$16 sps:$4 sm:$0xff]   ;;  %v2838_v14 = vld [vmem:[%s4260_s1 + $0x80] ss:$16 sps:$4 sm:$0xff]  }
   0x8   :  { %1299 = vmatpush1.bf16.msra.mxu1 %v2827_v7  ;;  %1259 = vmatprep.subr.bf16.mxu0 %v2828_v8  ;;  %v2836_v13 = vld [vmem:[%s4260_s1 + $0x284] ss:$16 sps:$4 sm:$0xff]   ;;  %v2839_v15 = vld [vmem:[%s4260_s1 + $0x280] ss:$16 sps:$4 sm:$0xff]  }
   0x9   :  { %1300 = vmatprep.subr.bf16.mxu1 %v2830_v9  ;;  %v2840_v16 = vld [vmem:[%s4260_s1 + $0x64] ss:$16 sps:$4 sm:$0xff]   ;;  %v2844_v18 = vld [vmem:[%s4260_s1 + $0x60] ss:$16 sps:$4 sm:$0xff]  }
   0xa   :  { %v2842_v17 = vld [vmem:[%s4260_s1 + $0x264] ss:$16 sps:$4 sm:$0xff]   ;;  %v2845_v19 = vld [vmem:[%s4260_s1 + $0x260] ss:$16 sps:$4 sm:$0xff]  }
   0xb   :  { %1260 = vmatpush1.bf16.msra.mxu0 %v2832_v10  ;;  %v2846_v20 = vld [vmem:[%s4260_s1 + $0x44] ss:$16 sps:$4 sm:$0xff]   ;;  %v2850_v22 = vld [vmem:[%s4260_s1 + $0x40] ss:$16 sps:$4 sm:$0xff]  }
   0xc   :  { %1301 = vmatpush1.bf16.msra.mxu1 %v2833_v11  ;;  %1261 = vmatprep.subr.bf16.mxu0 %v2834_v12  ;;  %v2848_v21 = vld [vmem:[%s4260_s1 + $0x244] ss:$16 sps:$4 sm:$0xff]   ;;  %v2851_v23 = vld [vmem:[%s4260_s1 + $0x240] ss:$16 sps:$4 sm:$0xff]  }
   0xd   :  { %1302 = vmatprep.subr.bf16.mxu1 %v2836_v13  ;;  %v2852_v24 = vld [vmem:[%s4260_s1 + $0x24] ss:$16 sps:$4 sm:$0xff]   ;;  %v2856_v26 = vld [vmem:[%s4260_s1 + $0x20] ss:$16 sps:$4 sm:$0xff]   ;;  %v2923_v13 = vld [vmem:[%s4260_s1 + $0xec] ss:$16 sps:$4 sm:$0xff]  }
   0xe   :  { %v2854_v25 = vld [vmem:[%s4260_s1 + $0x224] ss:$16 sps:$4 sm:$0xff]   ;;  %v2857_v27 = vld [vmem:[%s4260_s1 + $0x220] ss:$16 sps:$4 sm:$0xff]  }
   0xf   :  { %1262 = vmatpush1.bf16.msra.mxu0 %v2838_v14  ;;  %v2858_v28 = vld [vmem:[%s4260_s1 + $0x4] ss:$16 sps:$4 sm:$0xff]   ;;  %v2862_v30 = vld [vmem:[%s4260_s1] ss:$16 sps:$4 sm:$0xff]  }
  0x10   :  { %1303 = vmatpush1.bf16.msra.mxu1 %v2839_v15  ;;  %1263 = vmatprep.subr.bf16.mxu0 %v2840_v16  ;;  %v2860_v29 = vld [vmem:[%s4260_s1 + $0x204] ss:$16 sps:$4 sm:$0xff]   ;;  %v2863_v31 = vld [vmem:[%s4260_s1 + $0x200] ss:$16 sps:$4 sm:$0xff]   ;;  %v3234_v16 = vmov 0  }
  0x11   :  { %1304 = vmatprep.subr.bf16.mxu1 %v2842_v17  ;;  %v2864_v32 = vld [vmem:[%s4260_s1 + $0x1e4] ss:$16 sps:$4 sm:$0xff]   ;;  %v2868_v34 = vld [vmem:[%s4260_s1 + $0x1e0] ss:$16 sps:$4 sm:$0xff]  }
  0x12   :  { %v2866_v33 = vld [vmem:[%s4260_s1 + $0x3e4] ss:$16 sps:$4 sm:$0xff]   ;;  %v2869_v35 = vld [vmem:[%s4260_s1 + $0x3e0] ss:$16 sps:$4 sm:$0xff]  }
  0x13   :  { %1264 = vmatpush1.bf16.msra.mxu0 %v2844_v18  ;;  %v2870_v36 = vld [vmem:[%s4260_s1 + $0x1c4] ss:$16 sps:$4 sm:$0xff]   ;;  %v2874_v38 = vld [vmem:[%s4260_s1 + $0x1c0] ss:$16 sps:$4 sm:$0xff]   ;;  %v2921_v18 = vld [vmem:[%s4260_s1 + $0xe8] ss:$16 sps:$4 sm:$0xff]  }
  0x14   :  { %1305 = vmatpush1.bf16.msra.mxu1 %v2845_v19  ;;  %1265 = vmatprep.subr.bf16.mxu0 %v2846_v20  ;;  %v2872_v37 = vld [vmem:[%s4260_s1 + $0x3c4] ss:$16 sps:$4 sm:$0xff]   ;;  %v2875_v39 = vld [vmem:[%s4260_s1 + $0x3c0] ss:$16 sps:$4 sm:$0xff]  }
  0x15   :  { %1306 = vmatprep.subr.bf16.mxu1 %v2848_v21  ;;  %v2876_v40 = vld [vmem:[%s4260_s1 + $0x1a4] ss:$16 sps:$4 sm:$0xff]   ;;  %v2880_v42 = vld [vmem:[%s4260_s1 + $0x1a0] ss:$16 sps:$4 sm:$0xff]   ;;  %v2929_v21 = vld [vmem:[%s4260_s1 + $0xcc] ss:$16 sps:$4 sm:$0xff]  }
  0x16   :  { %v2878_v41 = vld [vmem:[%s4260_s1 + $0x3a4] ss:$16 sps:$4 sm:$0xff]   ;;  %v2881_v43 = vld [vmem:[%s4260_s1 + $0x3a0] ss:$16 sps:$4 sm:$0xff]  }
  0x17   :  { %1266 = vmatpush1.bf16.msra.mxu0 %v2850_v22  ;;  %v2882_v44 = vld [vmem:[%s4260_s1 + $0x184] ss:$16 sps:$4 sm:$0xff]   ;;  %v2886_v47 = vld [vmem:[%s4260_s1 + $0x180] ss:$16 sps:$4 sm:$0xff]  }
  0x18   :  { %1307 = vmatpush1.bf16.msra.mxu1 %v2851_v23  ;;  %1267 = vmatprep.subr.bf16.mxu0 %v2852_v24  ;;  %v2884_v45 = vld [vmem:[%s4260_s1 + $0x384] ss:$16 sps:$4 sm:$0xff]   ;;  %v2887_v48 = vld [vmem:[%s4260_s1 + $0x380] ss:$16 sps:$4 sm:$0xff]   ;;  %v2927_v23 = vld [vmem:[%s4260_s1 + $0xc8] ss:$16 sps:$4 sm:$0xff]  }
  0x19   :  { %1308 = vmatprep.subr.bf16.mxu1 %v2854_v25  ;;  %v2888_v51 = vld [vmem:[%s4260_s1 + $0x164] ss:$16 sps:$4 sm:$0xff]   ;;  %v2892_v54 = vld [vmem:[%s4260_s1 + $0x160] ss:$16 sps:$4 sm:$0xff]   ;;  %v2935_v25 = vld [vmem:[%s4260_s1 + $0xac] ss:$16 sps:$4 sm:$0xff]  }
  0x1a   :  { %v2890_v53 = vld [vmem:[%s4260_s1 + $0x364] ss:$16 sps:$4 sm:$0xff]   ;;  %v2893_v55 = vld [vmem:[%s4260_s1 + $0x360] ss:$16 sps:$4 sm:$0xff]  }
  0x1b   :  { %1268 = vmatpush1.bf16.msra.mxu0 %v2856_v26  ;;  %v2894_v56 = vld [vmem:[%s4260_s1 + $0x144] ss:$16 sps:$4 sm:$0xff]   ;;  %v2898_v58 = vld [vmem:[%s4260_s1 + $0x140] ss:$16 sps:$4 sm:$0xff]  }
  0x1c   :  { %1309 = vmatpush1.bf16.msra.mxu1 %v2857_v27  ;;  %1269 = vmatprep.subr.bf16.mxu0 %v2858_v28  ;;  %v2896_v57 = vld [vmem:[%s4260_s1 + $0x344] ss:$16 sps:$4 sm:$0xff]   ;;  %v2899_v59 = vld [vmem:[%s4260_s1 + $0x340] ss:$16 sps:$4 sm:$0xff]   ;;  %v2933_v27 = vld [vmem:[%s4260_s1 + $0xa8] ss:$16 sps:$4 sm:$0xff]  }
  0x1d   :  { %1310 = vmatprep.subr.bf16.mxu1 %v2860_v29  ;;  %v2900_v60 = vld [vmem:[%s4260_s1 + $0x124] ss:$16 sps:$4 sm:$0xff]   ;;  %v2904_v62 = vld [vmem:[%s4260_s1 + $0x120] ss:$16 sps:$4 sm:$0xff]   ;;  %v2941_v29 = vld [vmem:[%s4260_s1 + $0x8c] ss:$16 sps:$4 sm:$0xff]  }
  0x1e   :  { %v2902_v61 = vld [vmem:[%s4260_s1 + $0x324] ss:$16 sps:$4 sm:$0xff]   ;;  %v2905_v63 = vld [vmem:[%s4260_s1 + $0x320] ss:$16 sps:$4 sm:$0xff]  }
  0x1f   :  { %1270 = vmatpush1.bf16.msra.mxu0 %v2862_v30  ;;  %v2906_v0 = vld [vmem:[%s4260_s1 + $0x104] ss:$16 sps:$4 sm:$0xff]   ;;  %v2910_v2 = vld [vmem:[%s4260_s1 + $0x100] ss:$16 sps:$4 sm:$0xff]  }
  0x20   :  { %1311 = vmatpush1.bf16.msra.mxu1 %v2863_v31  ;;  %1271 = vmatprep.subr.bf16.mxu0 %v2864_v32  ;;  %v2908_v1 = vld [vmem:[%s4260_s1 + $0x304] ss:$16 sps:$4 sm:$0xff]   ;;  %v2911_v3 = vld [vmem:[%s4260_s1 + $0x300] ss:$16 sps:$4 sm:$0xff]   ;;  %v2939_v31 = vld [vmem:[%s4260_s1 + $0x88] ss:$16 sps:$4 sm:$0xff]  }
  0x21   :  { %1312 = vmatprep.subr.bf16.mxu1 %v2866_v33  ;;  %v39_v4 = vld [vmem:[%s4261_s0] sm:$0xff]  ;;  %v41_v5 = vld [vmem:[%s4261_s0 + $0x10] sm:$0xff]  ;;  %v2947_v33 = vld [vmem:[%s4260_s1 + $0x6c] ss:$16 sps:$4 sm:$0xff]  }
  0x22   :  { %v2914_v6 = vld [vmem:[%s4260_s1 + $0x4e4] ss:$16 sps:$4 sm:$0xff]   ;;  %v3513_v8 = vpack.c.bf16 %v39_v4, %v39_v4  ;;  %v3515_v9 = vpack.c.bf16 %v41_v5, %v41_v5  ;;  %v2912_v10 = vld [vmem:[%s4260_s1 + $0x4e0] ss:$16 sps:$4 sm:$0xff]   ;;  %v2995_v4 = vld [vmem:[%s4260_s1 + $0x16c] ss:$16 sps:$4 sm:$0xff]  }
  0x23   :  { %1272 = vmatpush2.bf16.msra.mxu0 %v2868_v34  ;;  %v2917_v7 = vld [vmem:[%s4260_s1 + $0x604] ss:$16 sps:$4 sm:$0xff]   ;;  %v2915_v11 = vld [vmem:[%s4260_s1 + $0x600] ss:$16 sps:$4 sm:$0xff]  }
  0x24   :  { %1313 = vmatpush2.bf16.msra.mxu1 %v2869_v35  ;;  %1273 = vmatprep.subr.bf16.mxu0 %v2870_v36  ;;  %v2920_v12 = vld [vmem:[%s4260_s1 + $0x4c4] ss:$16 sps:$4 sm:$0xff]   ;;  %v2918_v14 = vld [vmem:[%s4260_s1 + $0x4c0] ss:$16 sps:$4 sm:$0xff]   ;;  %v44_v35 = vld [vmem:[%s4261_s0 + $0x28] sm:$0xff] }
  0x25   :  { %1314 = vmatprep.subr.bf16.mxu1 %v2872_v37  ;;  %v45_v15 = vld [vmem:[%s4261_s0 + $0x30] sm:$0xff]  ;;  %v3597_v36 = vpack.c.bf16 %v44_v35, %v44_v35  ;;  %v2945_v37 = vld [vmem:[%s4260_s1 + $0x68] ss:$16 sps:$4 sm:$0xff]  }
  0x26   :  { %v2926_v17 = vld [vmem:[%s4260_s1 + $0x4a4] ss:$16 sps:$4 sm:$0xff]   ;;  %v3544_v19 = vpack.c.bf16 %v45_v15, %v45_v15  ;;  %v2924_v20 = vld [vmem:[%s4260_s1 + $0x4a0] ss:$16 sps:$4 sm:$0xff]   ;;  %v3032_v35 = vld [vmem:[%s4260_s1 + $0x268] ss:$16 sps:$4 sm:$0xff]  }
  0x27   :  { %1274 = vmatpush2.bf16.msra.mxu0 %v2874_v38  ;;  %v2932_v22 = vld [vmem:[%s4260_s1 + $0x484] ss:$16 sps:$4 sm:$0xff]   ;;  %v2930_v24 = vld [vmem:[%s4260_s1 + $0x480] ss:$16 sps:$4 sm:$0xff]  }
  0x28   :  { %1315 = vmatpush2.bf16.msra.mxu1 %v2875_v39  ;;  %1275 = vmatprep.subr.bf16.mxu0 %v2876_v40  ;;  %v2938_v26 = vld [vmem:[%s4260_s1 + $0x464] ss:$16 sps:$4 sm:$0xff]   ;;  %v2936_v28 = vld [vmem:[%s4260_s1 + $0x460] ss:$16 sps:$4 sm:$0xff]   ;;  %v2953_v39 = vld [vmem:[%s4260_s1 + $0x4c] ss:$16 sps:$4 sm:$0xff]  }
  0x29   :  { %1316 = vmatprep.subr.bf16.mxu1 %v2878_v41  ;;  %v2944_v30 = vld [vmem:[%s4260_s1 + $0x444] ss:$16 sps:$4 sm:$0xff]   ;;  %v2942_v32 = vld [vmem:[%s4260_s1 + $0x440] ss:$16 sps:$4 sm:$0xff]   ;;  %v2951_v41 = vld [vmem:[%s4260_s1 + $0x48] ss:$16 sps:$4 sm:$0xff]  }
  0x2a   :  { %v2950_v34 = vld [vmem:[%s4260_s1 + $0x424] ss:$16 sps:$4 sm:$0xff]   ;;  %v2948_v38 = vld [vmem:[%s4260_s1 + $0x420] ss:$16 sps:$4 sm:$0xff]  }
  0x2b   :  { %1276 = vmatpush2.bf16.msra.mxu0 %v2880_v42  ;;  %v2956_v40 = vld [vmem:[%s4260_s1 + $0x404] ss:$16 sps:$4 sm:$0xff]   ;;  %v2954_v42 = vld [vmem:[%s4260_s1 + $0x400] ss:$16 sps:$4 sm:$0xff]  }
  0x2c   :  { %1317 = vmatpush2.bf16.msra.mxu1 %v2881_v43  ;;  %1277 = vmatprep.subr.bf16.mxu0 %v2882_v44  ;;  %v2959_v43 = vld [vmem:[%s4260_s1 + $0x2c] ss:$16 sps:$4 sm:$0xff]   ;;  %v2962_v44 = vld [vmem:[%s4260_s1 + $0x5e4] ss:$16 sps:$4 sm:$0xff]   ;;  %v2960_v46 = vld [vmem:[%s4260_s1 + $0x5e0] ss:$16 sps:$4 sm:$0xff]  }
  0x2d   :  { %1318 = vmatprep.subr.bf16.mxu1 %v2884_v45  ;;  %v2957_v45 = vld [vmem:[%s4260_s1 + $0x28] ss:$16 sps:$4 sm:$0xff]   ;;  %v2966_v50 = vld [vmem:[%s4260_s1 + $0x5c0] ss:$16 sps:$4 sm:$0xff]   ;;  %v2998_v5 = vld [vmem:[%s4260_s1 + $0x524] ss:$16 sps:$4 sm:$0xff]  }
  0x2e   :  { %v43_v15 = vld [vmem:[%s4261_s0 + $0x20] sm:$0xff] }
  0x2f   :  { %1278 = vmatpush2.bf16.msra.mxu0 %v2886_v47  ;;  %v2965_v47 = vld [vmem:[%s4260_s1 + $0xc] ss:$16 sps:$4 sm:$0xff]  }
  0x30   :  { %1319 = vmatpush2.bf16.msra.mxu1 %v2887_v48  ;;  %1279 = vmatprep.subr.bf16.mxu0 %v2888_v51  ;;  %v2968_v48 = vld [vmem:[%s4260_s1 + $0x5c4] ss:$16 sps:$4 sm:$0xff]   ;;  %v2971_v51 = vld [vmem:[%s4260_s1 + $0x1ec] ss:$16 sps:$4 sm:$0xff]  }
  0x31   :  { %1320 = vmatprep.subr.bf16.mxu1 %v2890_v53  ;;  %v2974_v53 = vld [vmem:[%s4260_s1 + $0x5a4] ss:$16 sps:$4 sm:$0xff]  }
  0x33   :  { %1280 = vmatpush2.bf16.msra.mxu0 %v2892_v54  ;;  %v2969_v54 = vld [vmem:[%s4260_s1 + $0x1e8] ss:$16 sps:$4 sm:$0xff]  }
  0x34   :  { %1321 = vmatpush2.bf16.msra.mxu1 %v2893_v55  ;;  %1281 = vmatprep.subr.bf16.mxu0 %v2894_v56  ;;  %v2972_v55 = vld [vmem:[%s4260_s1 + $0x5a0] ss:$16 sps:$4 sm:$0xff]   ;;  %v2977_v56 = vld [vmem:[%s4260_s1 + $0x1cc] ss:$16 sps:$4 sm:$0xff]  }
  0x35   :  { %1322 = vmatprep.subr.bf16.mxu1 %v2896_v57  ;;  %v2980_v57 = vld [vmem:[%s4260_s1 + $0x584] ss:$16 sps:$4 sm:$0xff]  }
  0x37   :  { %1282 = vmatpush2.bf16.msra.mxu0 %v2898_v58  ;;  %v2975_v58 = vld [vmem:[%s4260_s1 + $0x1c8] ss:$16 sps:$4 sm:$0xff]  }
  0x38   :  { %1323 = vmatpush2.bf16.msra.mxu1 %v2899_v59  ;;  %1283 = vmatprep.subr.bf16.mxu0 %v2900_v60  ;;  %v2978_v59 = vld [vmem:[%s4260_s1 + $0x580] ss:$16 sps:$4 sm:$0xff]   ;;  %v2983_v60 = vld [vmem:[%s4260_s1 + $0x1ac] ss:$16 sps:$4 sm:$0xff]  }
  0x39   :  { %1324 = vmatprep.subr.bf16.mxu1 %v2902_v61  ;;  %v2986_v61 = vld [vmem:[%s4260_s1 + $0x564] ss:$16 sps:$4 sm:$0xff]  }
  0x3b   :  { %1284 = vmatpush2.bf16.msra.mxu0 %v2904_v62  ;;  %v2981_v62 = vld [vmem:[%s4260_s1 + $0x1a8] ss:$16 sps:$4 sm:$0xff]  }
  0x3c   :  { %1325 = vmatpush2.bf16.msra.mxu1 %v2905_v63  ;;  %1285 = vmatprep.subr.bf16.mxu0 %v2906_v0  ;;  %v2984_v63 = vld [vmem:[%s4260_s1 + $0x560] ss:$16 sps:$4 sm:$0xff]   ;;  %v2989_v0 = vld [vmem:[%s4260_s1 + $0x18c] ss:$16 sps:$4 sm:$0xff]  }
  0x3d   :  { %1326 = vmatprep.subr.bf16.mxu1 %v2908_v1  ;;  %v2992_v1 = vld [vmem:[%s4260_s1 + $0x544] ss:$16 sps:$4 sm:$0xff]  }
  0x3f   :  { %1286 = vmatpush2.bf16.msra.mxu0 %v2910_v2  ;;  %v2987_v2 = vld [vmem:[%s4260_s1 + $0x188] ss:$16 sps:$4 sm:$0xff]  }
  0x40   :  { %1327 = vmatpush2.bf16.msra.mxu1 %v2911_v3  ;;  %1337 = vmatprep.subr.bf16.mxu0 %v2914_v6  ;;  %v2990_v3 = vld [vmem:[%s4260_s1 + $0x540] ss:$16 sps:$4 sm:$0xff]   ;;  %v2993_v6 = vld [vmem:[%s4260_s1 + $0x168] ss:$16 sps:$4 sm:$0xff]  }
  0x41   :  { %1392 = vmatprep.subr.bf16.mxu1 %v2917_v7  ;;  %v2996_v7 = vld [vmem:[%s4260_s1 + $0x520] ss:$16 sps:$4 sm:$0xff]  }
  0x42   :  { %1288 = vmatmul.mubr.bf16.vlgmr.msra.gmra.mxu0 %v3513_v8 }
  0x43   :  { %1329 = vmatmul.mubr.bf16.vlgmr.msra.gmra.mxu1 %v3515_v9  ;;  %1338 = vmatpush1.bf16.msra.mxu0 %v2912_v10  ;;  %v3001_v10 = vld [vmem:[%s4260_s1 + $0x14c] ss:$16 sps:$4 sm:$0xff]  }
  0x44   :  { %1393 = vmatpush1.bf16.msra.mxu1 %v2915_v11  ;;  %1339 = vmatprep.subr.bf16.mxu0 %v2920_v12  ;;  %v3004_v11 = vld [vmem:[%s4260_s1 + $0x504] ss:$16 sps:$4 sm:$0xff]   ;;  %v2999_v12 = vld [vmem:[%s4260_s1 + $0x148] ss:$16 sps:$4 sm:$0xff]  }
  0x45   :  { %1410 = vmatprep.mubr.bf16.mxu1 %v3234_v16  ;;  %1419 = vmatprep.subr.bf16.mxu1 %v2923_v13  ;;  %v3002_v13 = vld [vmem:[%s4260_s1 + $0x500] ss:$16 sps:$4 sm:$0xff]  }
  0x46   :  { %1369 = vmatprep.mubr.bf16.mxu0 %v3597_v36 }
  0x47   :  { %1340 = vmatpush1.bf16.msra.mxu0 %v2918_v14  ;;  %v3007_v14 = vld [vmem:[%s4260_s1 + $0x12c] ss:$16 sps:$4 sm:$0xff]  }
  0x48   :  { %1341 = vmatprep.subr.bf16.mxu0 %v2926_v17  ;;  %v3010_v17 = vld [vmem:[%s4260_s1 + $0x2ec] ss:$16 sps:$4 sm:$0xff]  }
  0x4b   :  { %2647 = vmatmul.mubr.msk.bf16.vlgmr.msra.gmra.mxu1 %vm1251_vm0, %v3544_v19  ;;  %1342 = vmatpush1.bf16.msra.mxu0 %v2924_v20  ;;  %v3726_v20 = vpack.c.bf16 %v43_v15, %v43_v15  ;;  %v3097_v15 = vld [vmem:[%s4260_s1 + $0x54c] ss:$16 sps:$4 sm:$0xff]  }
  0x4c   :  { %1420 = vmatpush1.bf16.msra.mxu1 %v2921_v18  ;;  %1343 = vmatprep.subr.bf16.mxu0 %v2932_v22  ;;  %v3005_v18 = vld [vmem:[%s4260_s1 + $0x128] ss:$16 sps:$4 sm:$0xff]   ;;  %v3013_v22 = vld [vmem:[%s4260_s1 + $0x10c] ss:$16 sps:$4 sm:$0xff]  }
  0x4d   :  { %1421 = vmatprep.subr.bf16.mxu1 %v2929_v21  ;;  %1451 = vmatprep.mubr.bf16.mxu1 %v3444_v49  ;;  %v2963_v49 = vld [vmem:[%s4260_s1 + $0x8] ss:$16 sps:$4 sm:$0xff]  }
  0x4e   :  { %v3008_v21 = vld [vmem:[%s4260_s1 + $0x2e8] ss:$16 sps:$4 sm:$0xff]  }
  0x4f   :  { %1344 = vmatpush1.bf16.msra.mxu0 %v2930_v24  ;;  %v3011_v24 = vld [vmem:[%s4260_s1 + $0x108] ss:$16 sps:$4 sm:$0xff]  }
  0x50   :  { %1422 = vmatpush1.bf16.msra.mxu1 %v2927_v23  ;;  %1345 = vmatprep.subr.bf16.mxu0 %v2938_v26  ;;  %v3016_v23 = vld [vmem:[%s4260_s1 + $0x2cc] ss:$16 sps:$4 sm:$0xff]  }
  0x51   :  { %1423 = vmatprep.subr.bf16.mxu1 %v2935_v25  ;;  %v3014_v25 = vld [vmem:[%s4260_s1 + $0x2c8] ss:$16 sps:$4 sm:$0xff]   ;;  %v3019_v26 = vld [vmem:[%s4260_s1 + $0x4ec] ss:$16 sps:$4 sm:$0xff]  }
  0x53   :  { %1346 = vmatpush1.bf16.msra.mxu0 %v2936_v28  ;;  %v3017_v28 = vld [vmem:[%s4260_s1 + $0x4e8] ss:$16 sps:$4 sm:$0xff]  }
  0x54   :  { %1424 = vmatpush1.bf16.msra.mxu1 %v2933_v27  ;;  %1347 = vmatprep.subr.bf16.mxu0 %v2944_v30  ;;  %v3022_v27 = vld [vmem:[%s4260_s1 + $0x2ac] ss:$16 sps:$4 sm:$0xff]  }
  0x55   :  { %1425 = vmatprep.subr.bf16.mxu1 %v2941_v29  ;;  %v3020_v29 = vld [vmem:[%s4260_s1 + $0x2a8] ss:$16 sps:$4 sm:$0xff]   ;;  %v3025_v30 = vld [vmem:[%s4260_s1 + $0x4cc] ss:$16 sps:$4 sm:$0xff]  }
  0x57   :  { %1348 = vmatpush1.bf16.msra.mxu0 %v2942_v32  ;;  %v3026_v32 = vld [vmem:[%s4260_s1 + $0x288] ss:$16 sps:$4 sm:$0xff]  }
  0x58   :  { %1426 = vmatpush1.bf16.msra.mxu1 %v2939_v31  ;;  %1349 = vmatprep.subr.bf16.mxu0 %v2950_v34  ;;  %v3023_v31 = vld [vmem:[%s4260_s1 + $0x4c8] ss:$16 sps:$4 sm:$0xff]  }
  0x59   :  { %1427 = vmatprep.subr.bf16.mxu1 %v2947_v33  ;;  %v3031_v33 = vld [vmem:[%s4260_s1 + $0x4ac] ss:$16 sps:$4 sm:$0xff]   ;;  %v3029_v34 = vld [vmem:[%s4260_s1 + $0x4a8] ss:$16 sps:$4 sm:$0xff]  }
  0x5b   :  { %1350 = vmatpush1.bf16.msra.mxu0 %v2948_v38  ;;  %v3040_v38 = vld [vmem:[%s4260_s1 + $0x24c] ss:$16 sps:$4 sm:$0xff]  }
  0x5c   :  { %1428 = vmatpush1.bf16.msra.mxu1 %v2945_v37  ;;  %1351 = vmatprep.subr.bf16.mxu0 %v2956_v40  ;;  %v3037_v37 = vld [vmem:[%s4260_s1 + $0x48c] ss:$16 sps:$4 sm:$0xff]  }
  0x5d   :  { %1429 = vmatprep.subr.bf16.mxu1 %v2953_v39  ;;  %v3038_v39 = vld [vmem:[%s4260_s1 + $0x248] ss:$16 sps:$4 sm:$0xff]   ;;  %v3043_v40 = vld [vmem:[%s4260_s1 + $0x46c] ss:$16 sps:$4 sm:$0xff]  }
  0x5f   :  { %1352 = vmatpush1.bf16.msra.mxu0 %v2954_v42  ;;  %v3041_v42 = vld [vmem:[%s4260_s1 + $0x468] ss:$16 sps:$4 sm:$0xff]  }
  0x60   :  { %1430 = vmatpush1.bf16.msra.mxu1 %v2951_v41  ;;  %1353 = vmatprep.subr.bf16.mxu0 %v2962_v44  ;;  %v3046_v41 = vld [vmem:[%s4260_s1 + $0x22c] ss:$16 sps:$4 sm:$0xff]  }
  0x61   :  { %1431 = vmatprep.subr.bf16.mxu1 %v2959_v43  ;;  %v3044_v43 = vld [vmem:[%s4260_s1 + $0x228] ss:$16 sps:$4 sm:$0xff]   ;;  %v3049_v44 = vld [vmem:[%s4260_s1 + $0x44c] ss:$16 sps:$4 sm:$0xff]  }
  0x63   :  { %1354 = vmatpush2.bf16.msra.mxu0 %v2960_v46  ;;  %v3047_v46 = vld [vmem:[%s4260_s1 + $0x448] ss:$16 sps:$4 sm:$0xff]  }
  0x64   :  { %1432 = vmatpush1.bf16.msra.mxu1 %v2957_v45  ;;  %1355 = vmatprep.subr.bf16.mxu0 %v2968_v48  ;;  %v3052_v45 = vld [vmem:[%s4260_s1 + $0x20c] ss:$16 sps:$4 sm:$0xff]  }
  0x65   :  { %1433 = vmatprep.subr.bf16.mxu1 %v2965_v47  ;;  %v3050_v47 = vld [vmem:[%s4260_s1 + $0x208] ss:$16 sps:$4 sm:$0xff]   ;;  %v3055_v48 = vld [vmem:[%s4260_s1 + $0x42c] ss:$16 sps:$4 sm:$0xff]  }
  0x67   :  { %1356 = vmatpush2.bf16.msra.mxu0 %v2966_v50  ;;  %v3053_v50 = vld [vmem:[%s4260_s1 + $0x428] ss:$16 sps:$4 sm:$0xff]  }
  0x68   :  { %1434 = vmatpush1.bf16.msra.mxu1 %v2963_v49  ;;  %1357 = vmatprep.subr.bf16.mxu0 %v2974_v53  ;;  %v3058_v49 = vld [vmem:[%s4260_s1 + $0x3ec] ss:$16 sps:$4 sm:$0xff]  }
  0x69   :  { %1435 = vmatprep.subr.bf16.mxu1 %v2971_v51  ;;  %v3056_v51 = vld [vmem:[%s4260_s1 + $0x3e8] ss:$16 sps:$4 sm:$0xff]   ;;  %v3061_v53 = vld [vmem:[%s4260_s1 + $0x40c] ss:$16 sps:$4 sm:$0xff]  }
  0x6b   :  { %1358 = vmatpush2.bf16.msra.mxu0 %v2972_v55  ;;  %v3059_v55 = vld [vmem:[%s4260_s1 + $0x408] ss:$16 sps:$4 sm:$0xff]  }
  0x6c   :  { %1436 = vmatpush2.bf16.msra.mxu1 %v2969_v54  ;;  %1359 = vmatprep.subr.bf16.mxu0 %v2980_v57  ;;  %v3064_v54 = vld [vmem:[%s4260_s1 + $0x3cc] ss:$16 sps:$4 sm:$0xff]  }
  0x6d   :  { %1437 = vmatprep.subr.bf16.mxu1 %v2977_v56  ;;  %v3062_v56 = vld [vmem:[%s4260_s1 + $0x3c8] ss:$16 sps:$4 sm:$0xff]   ;;  %v3067_v57 = vld [vmem:[%s4260_s1 + $0x5ec] ss:$16 sps:$4 sm:$0xff]  }
  0x6f   :  { %1360 = vmatpush2.bf16.msra.mxu0 %v2978_v59  ;;  %v3065_v59 = vld [vmem:[%s4260_s1 + $0x5e8] ss:$16 sps:$4 sm:$0xff]  }
  0x70   :  { %1438 = vmatpush2.bf16.msra.mxu1 %v2975_v58  ;;  %1361 = vmatprep.subr.bf16.mxu0 %v2986_v61  ;;  %v3070_v58 = vld [vmem:[%s4260_s1 + $0x3ac] ss:$16 sps:$4 sm:$0xff]  }
  0x71   :  { %1439 = vmatprep.subr.bf16.mxu1 %v2983_v60  ;;  %v3068_v60 = vld [vmem:[%s4260_s1 + $0x3a8] ss:$16 sps:$4 sm:$0xff]   ;;  %v3073_v61 = vld [vmem:[%s4260_s1 + $0x5cc] ss:$16 sps:$4 sm:$0xff]  }
  0x73   :  { %1362 = vmatpush2.bf16.msra.mxu0 %v2984_v63  ;;  %v3071_v63 = vld [vmem:[%s4260_s1 + $0x5c8] ss:$16 sps:$4 sm:$0xff]  }
  0x74   :  { %1440 = vmatpush2.bf16.msra.mxu1 %v2981_v62  ;;  %1363 = vmatprep.subr.bf16.mxu0 %v2992_v1  ;;  %v3076_v62 = vld [vmem:[%s4260_s1 + $0x38c] ss:$16 sps:$4 sm:$0xff]  }
  0x75   :  { %1441 = vmatprep.subr.bf16.mxu1 %v2989_v0  ;;  %v3074_v0 = vld [vmem:[%s4260_s1 + $0x388] ss:$16 sps:$4 sm:$0xff]   ;;  %v3079_v1 = vld [vmem:[%s4260_s1 + $0x5ac] ss:$16 sps:$4 sm:$0xff]  }
  0x77   :  { %1364 = vmatpush2.bf16.msra.mxu0 %v2990_v3  ;;  %v3077_v3 = vld [vmem:[%s4260_s1 + $0x5a8] ss:$16 sps:$4 sm:$0xff]  }
  0x78   :  { %1442 = vmatpush2.bf16.msra.mxu1 %v2987_v2  ;;  %1365 = vmatprep.subr.bf16.mxu0 %v2998_v5  ;;  %v3082_v2 = vld [vmem:[%s4260_s1 + $0x36c] ss:$16 sps:$4 sm:$0xff]  }
  0x79   :  { %1443 = vmatprep.subr.bf16.mxu1 %v2995_v4  ;;  %v3080_v4 = vld [vmem:[%s4260_s1 + $0x368] ss:$16 sps:$4 sm:$0xff]   ;;  %v3085_v5 = vld [vmem:[%s4260_s1 + $0x58c] ss:$16 sps:$4 sm:$0xff]  }
  0x7b   :  { %1366 = vmatpush2.bf16.msra.mxu0 %v2996_v7  ;;  %v3083_v7 = vld [vmem:[%s4260_s1 + $0x588] ss:$16 sps:$4 sm:$0xff]  }
  0x7c   :  { %1444 = vmatpush2.bf16.msra.mxu1 %v2993_v6  ;;  %1367 = vmatprep.subr.bf16.mxu0 %v3004_v11  ;;  %v3088_v6 = vld [vmem:[%s4260_s1 + $0x34c] ss:$16 sps:$4 sm:$0xff]  }
  0x7d   :  { %1445 = vmatprep.subr.bf16.mxu1 %v3001_v10  ;;  %v3086_v10 = vld [vmem:[%s4260_s1 + $0x348] ss:$16 sps:$4 sm:$0xff]   ;;  %v3091_v11 = vld [vmem:[%s4260_s1 + $0x56c] ss:$16 sps:$4 sm:$0xff]  }
  0x7f   :  { %1368 = vmatpush2.bf16.msra.mxu0 %v3002_v13  ;;  %v3089_v13 = vld [vmem:[%s4260_s1 + $0x568] ss:$16 sps:$4 sm:$0xff]  }
  0x80   :  { %1446 = vmatpush2.bf16.msra.mxu1 %v2999_v12  ;;  %1460 = vmatprep.subr.bf16.mxu0 %v3010_v17  ;;  %v3094_v12 = vld [vmem:[%s4260_s1 + $0x32c] ss:$16 sps:$4 sm:$0xff]  }
  0x81   :  { %1447 = vmatprep.subr.bf16.mxu1 %v3007_v14  ;;  %v3092_v14 = vld [vmem:[%s4260_s1 + $0x328] ss:$16 sps:$4 sm:$0xff]   ;;  %v3100_v17 = vld [vmem:[%s4260_s1 + $0x30c] ss:$16 sps:$4 sm:$0xff]  }
  0x82   :  { %1370 = vmatmul.mubr.bf16.vlgmr.msra.gmra.mxu0 %v3726_v20 }
  0x83   :  { %1461 = vmatpush1.bf16.msra.mxu0 %v3008_v21  ;;  %1492 = vmatprep.mubr.bf16.mxu0 %v3452_v52  ;;  %v3028_v52 = vld [vmem:[%s4260_s1 + $0x28c] ss:$16 sps:$4 sm:$0xff]   ;;  %v3098_v21 = vld [vmem:[%s4260_s1 + $0x308] ss:$16 sps:$4 sm:$0xff]  }
  0x84   :  { %1448 = vmatpush2.bf16.msra.mxu1 %v3005_v18  ;;  %1462 = vmatprep.subr.bf16.mxu0 %v3016_v23  ;;  %v3095_v18 = vld [vmem:[%s4260_s1 + $0x548] ss:$16 sps:$4 sm:$0xff]   ;;  %v3112_v23 = vld [vmem:[%s4262_s3 + $0x74] ss:$8 sps:$4 sm:$0xff]  }
  0x85   :  { %1449 = vmatprep.subr.bf16.mxu1 %v3013_v22  ;;  %v3103_v22 = vld [vmem:[%s4260_s1 + $0x52c] ss:$16 sps:$4 sm:$0xff]  }
  0x87   :  { %1463 = vmatpush1.bf16.msra.mxu0 %v3014_v25  ;;  %v3110_v25 = vld [vmem:[%s4262_s3 + $0x70] ss:$8 sps:$4 sm:$0xff]  }
  0x88   :  { %1450 = vmatpush2.bf16.msra.mxu1 %v3011_v24  ;;  %1464 = vmatprep.subr.bf16.mxu0 %v3022_v27  ;;  %v3101_v24 = vld [vmem:[%s4260_s1 + $0x528] ss:$16 sps:$4 sm:$0xff]   ;;  %v3115_v27 = vld [vmem:[%s4262_s3 + $0x64] ss:$8 sps:$4 sm:$0xff]  }
  0x89   :  { %1501 = vmatprep.subr.bf16.mxu1 %v3019_v26  ;;  %v3106_v26 = vld [vmem:[%s4260_s1 + $0x50c] ss:$16 sps:$4 sm:$0xff]  }
  0x8b   :  { %1452 = vmatmul.mubr.bf16.vlgmr.msra.gmra.mxu1 %v3513_v8  ;;  %1465 = vmatpush1.bf16.msra.mxu0 %v3020_v29  ;;  %v3034_v8 = vld [vmem:[%s4260_s1 + $0x26c] ss:$16 sps:$4 sm:$0xff]   ;;  %v3113_v29 = vld [vmem:[%s4262_s3 + $0x60] ss:$8 sps:$4 sm:$0xff]  }
  0x8c   :  { %1502 = vmatpush1.bf16.msra.mxu1 %v3017_v28  ;;  %1466 = vmatprep.subr.bf16.mxu0 %v3028_v52  ;;  %v3104_v28 = vld [vmem:[%s4260_s1 + $0x508] ss:$16 sps:$4 sm:$0xff]  }
  0x8d   :  { %1503 = vmatprep.subr.bf16.mxu1 %v3025_v30  ;;  %1533 = vmatprep.mubr.bf16.mxu1 %v3597_v36  ;;  %v3035_v36 = vld [vmem:[%s4260_s1 + $0x488] ss:$16 sps:$4 sm:$0xff]   ;;  %v3109_v30 = vld [vmem:[%s4260_s1 + $0x60c] ss:$16 sps:$4 sm:$0xff]  }
  0x8e   :  { %v3107_v52 = vld [vmem:[%s4260_s1 + $0x608] ss:$16 sps:$4 sm:$0xff]  }
  0x8f   :  { %1467 = vmatpush1.bf16.msra.mxu0 %v3026_v32  ;;  %v3121_v32 = vld [vmem:[%s4262_s3 + $0x44] ss:$8 sps:$4 sm:$0xff]  }
  0x90   :  { %1504 = vmatpush1.bf16.msra.mxu1 %v3023_v31  ;;  %1468 = vmatprep.subr.bf16.mxu0 %v3034_v8  ;;  %v3116_v31 = vld [vmem:[%s4262_s3 + $0x50] ss:$8 sps:$4 sm:$0xff]   ;;  %v3124_v8 = vld [vmem:[%s4262_s3 + $0x34] ss:$8 sps:$4 sm:$0xff]  }
  0x91   :  { %1505 = vmatprep.subr.bf16.mxu1 %v3031_v33  ;;  %v3119_v33 = vld [vmem:[%s4262_s3 + $0x40] ss:$8 sps:$4 sm:$0xff]  }
  0x93   :  { %1469 = vmatpush1.bf16.msra.mxu0 %v3032_v35  ;;  %v3127_v35 = vld [vmem:[%s4262_s3 + $0x24] ss:$8 sps:$4 sm:$0xff]  }
  0x94   :  { %1506 = vmatpush1.bf16.msra.mxu1 %v3029_v34  ;;  %1470 = vmatprep.subr.bf16.mxu0 %v3040_v38  ;;  %v3122_v34 = vld [vmem:[%s4262_s3 + $0x30] ss:$8 sps:$4 sm:$0xff]   ;;  %v3161_v38 = vld [vmem:[%s4262_s3 + $0x160] ss:$8 sps:$4 sm:$0xff]  }
  0x95   :  { %1507 = vmatprep.subr.bf16.mxu1 %v3037_v37  ;;  %v3163_v37 = vld [vmem:[%s4262_s3 + $0x164] ss:$8 sps:$4 sm:$0xff]  }
  0x97   :  { %1471 = vmatpush1.bf16.msra.mxu0 %v3038_v39  ;;  %v3166_v39 = vld [vmem:[%s4262_s3 + $0x154] ss:$8 sps:$4 sm:$0xff]  }
  0x98   :  { %1508 = vmatpush1.bf16.msra.mxu1 %v3035_v36  ;;  %1472 = vmatprep.subr.bf16.mxu0 %v3046_v41  ;;  %v3125_v36 = vld [vmem:[%s4262_s3 + $0x20] ss:$8 sps:$4 sm:$0xff]   ;;  %v3128_v41 = vld [vmem:[%s4262_s3 + $0x10] ss:$8 sps:$4 sm:$0xff]  }
  0x99   :  { %1509 = vmatprep.subr.bf16.mxu1 %v3043_v40  ;;  %v3164_v40 = vld [vmem:[%s4262_s3 + $0x150] ss:$8 sps:$4 sm:$0xff]  }
  0x9b   :  { %1473 = vmatpush1.bf16.msra.mxu0 %v3044_v43  ;;  %v3133_v43 = vld [vmem:[%s4262_s3 + $0x4] ss:$8 sps:$4 sm:$0xff]  }
  0x9c   :  { %1510 = vmatpush1.bf16.msra.mxu1 %v3041_v42  ;;  %1474 = vmatprep.subr.bf16.mxu0 %v3052_v45  ;;  %v3169_v42 = vld [vmem:[%s4262_s3 + $0x144] ss:$8 sps:$4 sm:$0xff]   ;;  %v3131_v45 = vld [vmem:[%s4262_s3] ss:$8 sps:$4 sm:$0xff]  }
  0x9d   :  { %1511 = vmatprep.subr.bf16.mxu1 %v3049_v44  ;;  %v3167_v44 = vld [vmem:[%s4262_s3 + $0x140] ss:$8 sps:$4 sm:$0xff]  }
  0x9f   :  { %1475 = vmatpush1.bf16.msra.mxu0 %v3050_v47  ;;  %v3136_v47 = vld [vmem:[%s4262_s3 + $0xf4] ss:$8 sps:$4 sm:$0xff]  }
  0xa0   :  { %1512 = vmatpush1.bf16.msra.mxu1 %v3047_v46  ;;  %1476 = vmatprep.subr.bf16.mxu0 %v3058_v49  ;;  %v3172_v46 = vld [vmem:[%s4262_s3 + $0x134] ss:$8 sps:$4 sm:$0xff]   ;;  %v3134_v49 = vld [vmem:[%s4262_s3 + $0xf0] ss:$8 sps:$4 sm:$0xff]  }
  0xa1   :  { %1513 = vmatprep.subr.bf16.mxu1 %v3055_v48  ;;  %v3170_v48 = vld [vmem:[%s4262_s3 + $0x130] ss:$8 sps:$4 sm:$0xff]  }
  0xa3   :  { %1477 = vmatpush2.bf16.msra.mxu0 %v3056_v51  ;;  %v3139_v51 = vld [vmem:[%s4262_s3 + $0xe4] ss:$8 sps:$4 sm:$0xff]  }
  0xa4   :  { %1514 = vmatpush1.bf16.msra.mxu1 %v3053_v50  ;;  %1478 = vmatprep.subr.bf16.mxu0 %v3064_v54  ;;  %v3175_v50 = vld [vmem:[%s4262_s3 + $0x124] ss:$8 sps:$4 sm:$0xff]   ;;  %v3137_v54 = vld [vmem:[%s4262_s3 + $0xe0] ss:$8 sps:$4 sm:$0xff]  }
  0xa5   :  { %1515 = vmatprep.subr.bf16.mxu1 %v3061_v53  ;;  %v3173_v53 = vld [vmem:[%s4262_s3 + $0x120] ss:$8 sps:$4 sm:$0xff]  }
  0xa7   :  { %1479 = vmatpush2.bf16.msra.mxu0 %v3062_v56  ;;  %v3142_v56 = vld [vmem:[%s4262_s3 + $0xd4] ss:$8 sps:$4 sm:$0xff]  }
  0xa8   :  { %1516 = vmatpush1.bf16.msra.mxu1 %v3059_v55  ;;  %1480 = vmatprep.subr.bf16.mxu0 %v3070_v58  ;;  %v3178_v55 = vld [vmem:[%s4262_s3 + $0x114] ss:$8 sps:$4 sm:$0xff]   ;;  %v3140_v58 = vld [vmem:[%s4262_s3 + $0xd0] ss:$8 sps:$4 sm:$0xff]  }
  0xa9   :  { %1517 = vmatprep.subr.bf16.mxu1 %v3067_v57  ;;  %v3176_v57 = vld [vmem:[%s4262_s3 + $0x110] ss:$8 sps:$4 sm:$0xff]  }
  0xab   :  { %1481 = vmatpush2.bf16.msra.mxu0 %v3068_v60  ;;  %v3145_v60 = vld [vmem:[%s4262_s3 + $0xc4] ss:$8 sps:$4 sm:$0xff]  }
  0xac   :  { %1518 = vmatpush2.bf16.msra.mxu1 %v3065_v59  ;;  %1482 = vmatprep.subr.bf16.mxu0 %v3076_v62  ;;  %v3181_v59 = vld [vmem:[%s4262_s3 + $0x104] ss:$8 sps:$4 sm:$0xff]   ;;  %v3143_v62 = vld [vmem:[%s4262_s3 + $0xc0] ss:$8 sps:$4 sm:$0xff]  }
  0xad   :  { %1519 = vmatprep.subr.bf16.mxu1 %v3073_v61  ;;  %v3179_v61 = vld [vmem:[%s4262_s3 + $0x100] ss:$8 sps:$4 sm:$0xff]  }
  0xaf   :  { %1483 = vmatpush2.bf16.msra.mxu0 %v3074_v0  ;;  %v3148_v0 = vld [vmem:[%s4262_s3 + $0xb4] ss:$8 sps:$4 sm:$0xff]  }
  0xb0   :  { %1520 = vmatpush2.bf16.msra.mxu1 %v3071_v63  ;;  %1484 = vmatprep.subr.bf16.mxu0 %v3082_v2  ;;  %v3184_v63 = vld [vmem:[%s4262_s3 + $0x1f4] ss:$8 sps:$4 sm:$0xff]   ;;  %v3146_v2 = vld [vmem:[%s4262_s3 + $0xb0] ss:$8 sps:$4 sm:$0xff]  }
  0xb1   :  { %1521 = vmatprep.subr.bf16.mxu1 %v3079_v1  ;;  %v3182_v1 = vld [vmem:[%s4262_s3 + $0x1f0] ss:$8 sps:$4 sm:$0xff]  }
  0xb3   :  { %1485 = vmatpush2.bf16.msra.mxu0 %v3080_v4  ;;  %v3151_v4 = vld [vmem:[%s4262_s3 + $0xa4] ss:$8 sps:$4 sm:$0xff]  }
  0xb4   :  { %1522 = vmatpush2.bf16.msra.mxu1 %v3077_v3  ;;  %1486 = vmatprep.subr.bf16.mxu0 %v3088_v6  ;;  %v3187_v3 = vld [vmem:[%s4262_s3 + $0x1e4] ss:$8 sps:$4 sm:$0xff]   ;;  %v3149_v6 = vld [vmem:[%s4262_s3 + $0xa0] ss:$8 sps:$4 sm:$0xff]  }
  0xb5   :  { %1523 = vmatprep.subr.bf16.mxu1 %v3085_v5  ;;  %v3185_v5 = vld [vmem:[%s4262_s3 + $0x1e0] ss:$8 sps:$4 sm:$0xff]  }
  0xb7   :  { %1487 = vmatpush2.bf16.msra.mxu0 %v3086_v10  ;;  %v3152_v10 = vld [vmem:[%s4262_s3 + $0x90] ss:$8 sps:$4 sm:$0xff]  }
  0xb8   :  { %1524 = vmatpush2.bf16.msra.mxu1 %v3083_v7  ;;  %1488 = vmatprep.subr.bf16.mxu0 %v3094_v12  ;;  %v3154_v7 = vld [vmem:[%s4262_s3 + $0x94] ss:$8 sps:$4 sm:$0xff]   ;;  %v3155_v12 = vld [vmem:[%s4262_s3 + $0x80] ss:$8 sps:$4 sm:$0xff]  }
  0xb9   :  { %1525 = vmatprep.subr.bf16.mxu1 %v3091_v11  ;;  %v3157_v11 = vld [vmem:[%s4262_s3 + $0x84] ss:$8 sps:$4 sm:$0xff]  }
  0xbb   :  { %1489 = vmatpush2.bf16.msra.mxu0 %v3092_v14 }
  0xbc   :  { %1526 = vmatpush2.bf16.msra.mxu1 %v3089_v13  ;;  %1490 = vmatprep.subr.bf16.mxu0 %v3100_v17  ;;  %v3188_v17 = vld [vmem:[%s4262_s3 + $0x1d0] ss:$8 sps:$4 sm:$0xff]  }
  0xbd   :  { %1527 = vmatprep.subr.bf16.mxu1 %v3097_v15  ;;  %v3190_v15 = vld [vmem:[%s4262_s3 + $0x1d4] ss:$8 sps:$4 sm:$0xff]  }
  0xbf   :  { %1491 = vmatpush2.bf16.msra.mxu0 %v3098_v21 }
  0xc0   :  { %1528 = vmatpush2.bf16.msra.mxu1 %v3095_v18  ;;  %1987 = vmatprep.subr.bf16.mxu0 %v3112_v23  ;;  %v3193_v23 = vld [vmem:[%s4262_s3 + $0x1c4] ss:$8 sps:$4 sm:$0xff]  }
  0xc1   :  { %1529 = vmatprep.subr.bf16.mxu1 %v3103_v22  ;;  %v3191_v22 = vld [vmem:[%s4262_s3 + $0x1c0] ss:$8 sps:$4 sm:$0xff]  }
  0xc2   :  { %1493 = vmatmul.mubr.bf16.vlgmr.msra.gmra.mxu0 %v3515_v9  ;;  %v3118_v9 = vld [vmem:[%s4262_s3 + $0x54] ss:$8 sps:$4 sm:$0xff]  }
  0xc3   :  { %1988 = vmatpush1.bf16.msra.mxu0 %v3110_v25 }
  0xc4   :  { %1530 = vmatpush2.bf16.msra.mxu1 %v3101_v24  ;;  %1989 = vmatprep.subr.bf16.mxu0 %v3115_v27 }
  0xc5   :  { %1531 = vmatprep.subr.bf16.mxu1 %v3106_v26 }
  0xc7   :  { %1990 = vmatpush1.bf16.msra.mxu0 %v3113_v29  ;;  %v3196_v29 = vld [vmem:[%s4262_s3 + $0x1b4] ss:$8 sps:$4 sm:$0xff]  }
  0xc8   :  { %1532 = vmatpush2.bf16.msra.mxu1 %v3104_v28  ;;  %1991 = vmatprep.subr.bf16.mxu0 %v3118_v9 }
  0xc9   :  { %1556 = vmatprep.subr.bf16.mxu1 %v3109_v30  ;;  %v3194_v30 = vld [vmem:[%s4262_s3 + $0x1b0] ss:$8 sps:$4 sm:$0xff]  }
  0xcb   :  { %1534 = vmatmul.mubr.bf16.vlgmr.msra.gmra.mxu1 %v3726_v20  ;;  %1992 = vmatpush1.bf16.msra.mxu0 %v3116_v31  ;;  %v3158_v20 = vld [vmem:[%s4262_s3 + $0x170] ss:$8 sps:$4 sm:$0xff]   ;;  %v3199_v31 = vld [vmem:[%s4262_s3 + $0x1a4] ss:$8 sps:$4 sm:$0xff]  }
  0xcc   :  { %1557 = vmatpush1.bf16.msra.mxu1 %v3107_v52  ;;  %1574 = vmatprep.mubr.bf16.mxu1 %v3234_v16  ;;  %v3160_v16 = vld [vmem:[%s4262_s3 + $0x174] ss:$8 sps:$4 sm:$0xff]  }
  0xcd   :  { %1993 = vmatprep.subr.bf16.mxu0 %v3121_v32  ;;  %2028 = vmatprep.subr.bf16.mxu1 %v3160_v16  ;;  %v3197_v32 = vld [vmem:[%s4262_s3 + $0x1a0] ss:$8 sps:$4 sm:$0xff]  }
  0xce   :  { %v3203_v16 = vld [vmem:[%s4262_s3 + $0x180] ss:$8 sps:$4 sm:$0xff]  }
  0xcf   :  { %1994 = vmatpush1.bf16.msra.mxu0 %v3119_v33 }
  0xd0   :  { %1995 = vmatprep.subr.bf16.mxu0 %v3124_v8  ;;  %v3202_v8 = vld [vmem:[%s4262_s3 + $0x194] ss:$8 sps:$4 sm:$0xff]  }
  0xd3   :  { %2648 = vmatmul.mubr.msk.bf16.vlgmr.msra.gmra.mxu1 %vm1251_vm0, %v3544_v19  ;;  %1996 = vmatpush1.bf16.msra.mxu0 %v3122_v34  ;;  %v3130_v19 = vld [vmem:[%s4262_s3 + $0x14] ss:$8 sps:$4 sm:$0xff]   ;;  %v3200_v34 = vld [vmem:[%s4262_s3 + $0x190] ss:$8 sps:$4 sm:$0xff]  }
  0xd4   :  { %2029 = vmatpush1.bf16.msra.mxu1 %v3158_v20  ;;  %1997 = vmatprep.subr.bf16.mxu0 %v3127_v35  ;;  %v3205_v20 = vld [vmem:[%s4262_s3 + $0x184] ss:$8 sps:$4 sm:$0xff]   ;;  %v251_v35 = vlaneseq }
  0xd5   :  { %2030 = vmatprep.subr.bf16.mxu1 %v3163_v37 }
  0xd6   :  { %v4130_v37 = vshrl.u32 %v251_v35, 7  ;;  %v3215_v35 = vld [vmem:[%s4264_s5 + $0x18] sm:$0xff]  }
  0xd7   :  { %1998 = vmatpush1.bf16.msra.mxu0 %v3125_v36  ;;  %v249_v36 = vld [vmem:[%s4263_s2] sm:$0xf] }
  0xd8   :  { %2031 = vmatpush1.bf16.msra.mxu1 %v3161_v38  ;;  %1999 = vmatprep.subr.bf16.mxu0 %v3130_v19  ;;  %v253_v38 = vsub.s32 0, %v4130_v37 }
  0xd9   :  { %2032 = vmatprep.subr.bf16.mxu1 %v3166_v39  ;;  %v257_v39 = vsub.s32 1, %v4130_v37 }
  0xda   :  { %v254_v19 = vrot.slane %v249_v36, %v253_v38 }
  0xdb   :  { %2000 = vmatpush1.bf16.msra.mxu0 %v3128_v41 }
  0xdc   :  { %2033 = vmatpush1.bf16.msra.mxu1 %v3164_v40  ;;  %2001 = vmatprep.subr.bf16.mxu0 %v3133_v43  ;;  %v258_v40 = vrot.slane %v249_v36, %v257_v39 }
  0xdd   :  { %2034 = vmatprep.subr.bf16.mxu1 %v3169_v42 }
  0xdf   :  { %2002 = vmatpush1.bf16.msra.mxu0 %v3131_v45 }
  0xe0   :  { %2035 = vmatpush1.bf16.msra.mxu1 %v3167_v44  ;;  %2003 = vmatprep.subr.bf16.mxu0 %v3136_v47 }
  0xe1   :  { %2036 = vmatprep.subr.bf16.mxu1 %v3172_v46 }
  0xe3   :  { %2004 = vmatpush2.bf16.msra.mxu0 %v3134_v49 }
  0xe4   :  { %2037 = vmatpush1.bf16.msra.mxu1 %v3170_v48  ;;  %2005 = vmatprep.subr.bf16.mxu0 %v3139_v51 }
  0xe5   :  { %2038 = vmatprep.subr.bf16.mxu1 %v3175_v50 }
  0xe7   :  { %2006 = vmatpush2.bf16.msra.mxu0 %v3137_v54 }
  0xe8   :  { %2039 = vmatpush1.bf16.msra.mxu1 %v3173_v53  ;;  %2007 = vmatprep.subr.bf16.mxu0 %v3142_v56 }
  0xe9   :  { %2040 = vmatprep.subr.bf16.mxu1 %v3178_v55 }
  0xeb   :  { %2008 = vmatpush2.bf16.msra.mxu0 %v3140_v58 }
  0xec   :  { %2041 = vmatpush1.bf16.msra.mxu1 %v3176_v57  ;;  %2009 = vmatprep.subr.bf16.mxu0 %v3145_v60 }
  0xed   :  { %2042 = vmatprep.subr.bf16.mxu1 %v3181_v59 }
  0xef   :  { %2010 = vmatpush2.bf16.msra.mxu0 %v3143_v62 }
  0xf0   :  { %2043 = vmatpush1.bf16.msra.mxu1 %v3179_v61  ;;  %2011 = vmatprep.subr.bf16.mxu0 %v3148_v0  ;;  %v261_v0 = vsub.s32 2, %v4130_v37 }
  0xf1   :  { %2044 = vmatprep.subr.bf16.mxu1 %v3184_v63 }
  0xf3   :  { %2012 = vmatpush2.bf16.msra.mxu0 %v3146_v2  ;;  %v265_v2 = vsub.s32 3, %v4130_v37  ;;  %v3228_v37 = vld [vmem:[%s4265_s7 + $0x8] sm:$0xff]  }
  0xf4   :  { %2045 = vmatpush2.bf16.msra.mxu1 %v3182_v1  ;;  %2013 = vmatprep.subr.bf16.mxu0 %v3151_v4  ;;  %v262_v4 = vrot.slane %v249_v36, %v261_v0 }
  0xf5   :  { %2046 = vmatprep.subr.bf16.mxu1 %v3187_v3 }
  0xf7   :  { %2014 = vmatpush2.bf16.msra.mxu0 %v3149_v6  ;;  %v266_v6 = vrot.slane %v249_v36, %v265_v2  ;;  %v3216_v36 = vld [vmem:[%s4264_s5 + $0x50] sm:$0xff]  }
  0xf8   :  { %2047 = vmatpush2.bf16.msra.mxu1 %v3185_v5  ;;  %2015 = vmatprep.subr.bf16.mxu0 %v3154_v7 }
  0xf9   :  { %2048 = vmatprep.subr.bf16.mxu1 %v3190_v15 }
  0xfb   :  { %2016 = vmatpush2.bf16.msra.mxu0 %v3152_v10 }
  0xfc   :  { %2017 = vmatprep.subr.bf16.mxu0 %v3157_v11  ;;  %2049 = vmatpush2.bf16.msra.mxu1 %v3188_v17 }
  0xfd   :  { %2050 = vmatprep.subr.bf16.mxu1 %v3193_v23 }
  0xff   :  { %2018 = vmatpush2.bf16.msra.mxu0 %v3155_v12 }
 0x100   :  { %2051 = vmatpush2.bf16.msra.mxu1 %v3191_v22 }
 0x101   :  { %2052 = vmatprep.subr.bf16.mxu1 %v3196_v29 }
 0x102   :  { %v1289_v13 = vpop.f32.mrf.mxu0 }
 0x103   :  { %v1330_v14 = vpop.f32.mrf.mxu1  ;;  %v1290_v41 = vadd.f32 %v1289_v13, %v254_v19  ;;  %v3217_v19 = vld [vmem:[%s4264_s5 + $0x10] sm:$0xff]  }
 0x104   :  { %v1291_v18 = vpop.f32.mrf.mxu0  ;;  %2053 = vmatpush2.bf16.msra.mxu1 %v3194_v30  ;;  %v3208_v30 = vld [vmem:[%s4264_s5 + $0x70] sm:$0xff]  }
 0x105   :  { %v1332_v21 = vpop.f32.mrf.mxu1  ;;  %2054 = vmatprep.subr.bf16.mxu1 %v3199_v31  ;;  %v1292_v42 = vadd.f32 %v1291_v18, %v258_v40  ;;  %v1331_v43 = vadd.f32 %v1330_v14, %v1290_v41  ;;  %v3218_v40 = vld [vmem:[%s4264_s5 + $0x48] sm:$0xff]  }
 0x106   :  { %v1293_v25 = vpop.f32.mrf.mxu0  ;;  %v3219_v41 = vld [vmem:[%s4264_s5 + $0x8] sm:$0xff]  }
 0x107   :  { %v1334_v24 = vpop.f32.mrf.mxu1  ;;  %v1333_v45 = vadd.f32 %v1332_v21, %v1292_v42  ;;  %v3206_v25 = vld [vmem:[%s4264_s5 + $0x78] sm:$0xff]   ;;  %v3220_v42 = vld [vmem:[%s4264_s5 + $0x40] sm:$0xff]  }
 0x108   :  { %v1294_v27 = vpop.f32.mrf.mxu0  ;;  %2055 = vmatpush2.bf16.msra.mxu1 %v3197_v32  ;;  %2745 = vmatprep.subr.bf16.mxu0 %v3206_v25  ;;  %v3210_v32 = vld [vmem:[%s4264_s5 + $0x68] sm:$0xff]  }
 0x109   :  { %v1335_v26 = vpop.f32.mrf.mxu1  ;;  %2056 = vmatprep.subr.bf16.mxu1 %v3202_v8  ;;  %v3211_v8 = vld [vmem:[%s4264_s5 + $0x28] sm:$0xff]  }
 0x10b   :  { %v1412_v28 = vpop.f32.mrf.mxu1 }
 0x10c   :  { %2057 = vmatpush2.bf16.msra.mxu1 %v3200_v34  ;;  %v3212_v34 = vld [vmem:[%s4264_s5 + $0x60] sm:$0xff]  }
 0x10d   :  { %v1414_v9 = vpop.f32.mrf.mxu1  ;;  %2058 = vmatprep.subr.bf16.mxu1 %v3205_v20  ;;  %v3213_v20 = vld [vmem:[%s4264_s5 + $0x20] sm:$0xff]  }
 0x10f   :  { %v1416_v52 = vpop.f32.mrf.mxu1 }
 0x110   :  { %2059 = vmatpush2.bf16.msra.mxu1 %v3203_v16  ;;  %v3209_v52 = vld [vmem:[%s4264_s5 + $0x30] sm:$0xff]   ;;  %v3214_v16 = vld [vmem:[%s4264_s5 + $0x58] sm:$0xff]  }
 0x111   :  { %v1417_v33 = vpop.f32.mrf.mxu1 }
 0x142   :  { %v1371_v44 = vpop.f32.mrf.mxu0 }
 0x143   :  { %v1372_v46 = vadd.f32 %v1371_v44, %v1331_v43  ;;  %v3221_v43 = vld [vmem:[%s4264_s5] sm:$0xff]   ;;  %v3235_v44 = vmov 0.0  }
 0x144   :  { %v1373_v47 = vpop.f32.mrf.mxu0  ;;  %2781 = vmatprep.subr.bf16.mxu1 %v3235_v44 }
 0x145   :  { %v1413_v48 = vadd.f32 %v1412_v28, %v1372_v46  ;;  %v1374_v49 = vadd.f32 %v1373_v47, %v1333_v45  ;;  %v3207_v28 = vld [vmem:[%s4264_s5 + $0x38] sm:$0xff]   ;;  %v3223_v46 = vld [vmem:[%s4265_s7 + $0x30] sm:$0xff]   ;;  %v3224_v47 = vld [vmem:[%s4265_s7 + $0x28] sm:$0xff]  }
 0x146   :  { %v1375_v50 = vpop.f32.mrf.mxu0  ;;  %v3222_v45 = vld [vmem:[%s4265_s7 + $0x38] sm:$0xff]  }
 0x147   :  { %v1415_v51 = vadd.f32 %v1414_v9, %v1374_v49  ;;  %v1583_v53 = vmax.f32 %v1413_v48, 0.0  ;;  %v3225_v48 = vld [vmem:[%s4265_s7 + $0x20] sm:$0xff]   ;;  %v3226_v49 = vld [vmem:[%s4265_s7 + $0x18] sm:$0xff]  }
 0x148   :  { %v1376_v54 = vpop.f32.mrf.mxu0 }
 0x149   :  { %v1584_v55 = vmax.f32 %v1415_v51, 0.0  ;;  %v1587_v58 = vpack.c.bf16 %v1583_v53, %v1583_v53 }
 0x14b   :  { %v1453_v56 = vpop.f32.mrf.mxu1  ;;  %v1588_v57 = vpack.c.bf16 %v1584_v55, %v1584_v55  ;;  %v1655_v55 = vld [vmem:[%s4266_s4] sm:$0x3] }
 0x14c   :  { %v1454_v10 = vadd.f32 %v1453_v56, %v262_v4  ;;  %v1660_v56 = vrot.slane %v1655_v55, %v253_v38  ;;  %v3227_v38 = vld [vmem:[%s4265_s7 + $0x10] sm:$0xff]  }
 0x14d   :  { %v1455_v59 = vpop.f32.mrf.mxu1  ;;  %2019 = vmatprep.mubr.bf16.mxu0 %v1588_v57  ;;  %v1664_v57 = vrot.slane %v1655_v55, %v257_v39  ;;  %v3229_v39 = vld [vmem:[%s4265_s7] sm:$0xff]  }
 0x14e   :  { %2020 = vmatmul.mubr.bf16.vlgmr.msra.gmra.mxu0 %v1587_v58  ;;  %v1456_v12 = vadd.f32 %v1455_v59, %v266_v6  ;;  %v3230_v6 = vld [vmem:[%s4267_s9 + $0x18] sm:$0xff]  }
 0x14f   :  { %v1457_v60 = vpop.f32.mrf.mxu1  ;;  %2746 = vmatpush3.bf16.msra.mxu0 %v3207_v28 }
 0x150   :  { %2747 = vmatprep.subr.bf16.mxu0 %v3208_v30 }
 0x151   :  { %v1458_v61 = vpop.f32.mrf.mxu1 }
 0x153   :  { %2748 = vmatpush3.bf16.msra.mxu0 %v3209_v52  ;;  %v2739_v52 = vld [vmem:[%s4270_s10] ss:$0 sm:$0xff] }
 0x154   :  { %2749 = vmatprep.subr.bf16.mxu0 %v3210_v32 }
 0x157   :  { %2750 = vmatpush3.bf16.msra.mxu0 %v3211_v8 }
 0x158   :  { %2751 = vmatprep.subr.bf16.mxu0 %v3212_v34 }
 0x15b   :  { %2752 = vmatpush3.bf16.msra.mxu0 %v3213_v20 }
 0x15c   :  { %2753 = vmatprep.subr.bf16.mxu0 %v3214_v16 }
 0x15f   :  { %2754 = vmatpush3.bf16.msra.mxu0 %v3215_v35 }
 0x160   :  { %2755 = vmatprep.subr.bf16.mxu0 %v3216_v36 }
 0x163   :  { %2756 = vmatpush3.bf16.msra.mxu0 %v3217_v19 }
 0x164   :  { %2757 = vmatprep.subr.bf16.mxu0 %v3218_v40 }
 0x167   :  { %2758 = vmatpush3.bf16.msra.mxu0 %v3219_v41 }
 0x168   :  { %2759 = vmatprep.subr.bf16.mxu0 %v3220_v42 }
 0x16b   :  { %2760 = vmatpush3.bf16.msra.mxu0 %v3221_v43 }
 0x16c   :  { %2801 = vmatprep.subr.bf16.mxu0 %v3235_v44 }
 0x182   :  { %v1494_v62 = vpop.f32.mrf.mxu0 }
 0x183   :  { %v1495_v13 = vadd.f32 %v1494_v62, %v1454_v10 }
 0x184   :  { %v1496_v63 = vpop.f32.mrf.mxu0 }
 0x185   :  { %v1497_v15 = vadd.f32 %v1496_v63, %v1456_v12 }
 0x186   :  { %v1498_v1 = vpop.f32.mrf.mxu0 }
 0x188   :  { %v1499_v3 = vpop.f32.mrf.mxu0 }
 0x18b   :  { %v1535_v5 = vpop.f32.mrf.mxu1 }
 0x18c   :  { %v1536_v17 = vadd.f32 %v1535_v5, %v1495_v13 }
 0x18d   :  { %v1537_v7 = vpop.f32.mrf.mxu1 }
 0x18e   :  { %v1538_v21 = vadd.f32 %v1537_v7, %v1497_v15  ;;  %v3231_v7 = vld [vmem:[%s4267_s9 + $0x10] sm:$0xff]  }
 0x18f   :  { %v1539_v11 = vpop.f32.mrf.mxu1 }
 0x190   :  { %v2713_v11 = vld [vmem:[%s4268_s6] ss:$0 sm:$0xff] }
 0x191   :  { %v1540_v14 = vpop.f32.mrf.mxu1 }
 0x193   :  { %v1576_v18 = vpop.f32.mrf.mxu1 }
 0x194   :  { %v1577_v22 = vadd.f32 %v1576_v18, %v1536_v17 }
 0x195   :  { %v1578_v23 = vpop.f32.mrf.mxu1 }
 0x196   :  { %v1579_v24 = vadd.f32 %v1578_v23, %v1538_v21  ;;  %v1585_v26 = vmax.f32 %v1577_v22, 0.0  ;;  %v3232_v22 = vld [vmem:[%s4267_s9 + $0x8] sm:$0xff]   ;;  %v3233_v23 = vld [vmem:[%s4267_s9] sm:$0xff]  }
 0x197   :  { %v1580_v27 = vpop.f32.mrf.mxu1 }
 0x198   :  { %v1586_v29 = vmax.f32 %v1579_v24, 0.0  ;;  %v1589_v33 = vpack.c.bf16 %v1585_v26, %v1585_v26  ;;  %v2730_v24 = vld [vmem:[%s4269_s8] ss:$0 sm:$0xff] }
 0x199   :  { %v1581_v9 = vpop.f32.mrf.mxu1 }
 0x19a   :  { %v1590_v31 = vpack.c.bf16 %v1586_v29, %v1586_v29 }
 0x19c   :  { %2060 = vmatprep.mubr.bf16.mxu1 %v1590_v31 }
 0x19d   :  { %2061 = vmatmul.mubr.bf16.vlgmr.msra.gmra.mxu1 %v1589_v33 }
 0x19e   :  { %2782 = vmatpush3.bf16.msra.mxu1 %v3222_v45  ;;  %2797 = vmatprep.mubr.msk.bf16.mxu1 %vm3236_vm1, %v3235_v44 }
 0x19f   :  { %2783 = vmatprep.subr.bf16.mxu1 %v3235_v44 }
 0x1a2   :  { %2784 = vmatpush3.bf16.msra.mxu1 %v3223_v46 }
 0x1a3   :  { %2785 = vmatprep.subr.bf16.mxu1 %v3235_v44 }
 0x1a6   :  { %2786 = vmatpush3.bf16.msra.mxu1 %v3224_v47 }
 0x1a7   :  { %2787 = vmatprep.subr.bf16.mxu1 %v3235_v44 }
 0x1aa   :  { %2788 = vmatpush3.bf16.msra.mxu1 %v3225_v48 }
 0x1ab   :  { %2789 = vmatprep.subr.bf16.mxu1 %v3235_v44 }
 0x1ae   :  { %2790 = vmatpush3.bf16.msra.mxu1 %v3226_v49 }
 0x1af   :  { %2791 = vmatprep.subr.bf16.mxu1 %v3235_v44 }
 0x1b2   :  { %2792 = vmatpush3.bf16.msra.mxu1 %v3227_v38 }
 0x1b3   :  { %2793 = vmatprep.subr.bf16.mxu1 %v3235_v44 }
 0x1b6   :  { %2794 = vmatpush3.bf16.msra.mxu1 %v3228_v37 }
 0x1b7   :  { %2795 = vmatprep.subr.bf16.mxu1 %v3235_v44 }
 0x1ba   :  { %2796 = vmatpush3.bf16.msra.mxu1 %v3229_v39 }
 0x20e   :  { %v2021_v50 = vpop.f32.mrf.mxu0 }
 0x20f   :  { %v2022_v58 = vadd.f32 %v2021_v50, %v1660_v56 }
 0x210   :  { %v2023_v51 = vpop.f32.mrf.mxu0 }
 0x211   :  { %v2024_v60 = vadd.f32 %v2023_v51, %v1664_v57 }
 0x212   :  { %v2025_v53 = vpop.f32.mrf.mxu0 }
 0x214   :  { %v2026_v54 = vpop.f32.mrf.mxu0 }
 0x25d   :  { %v2062_v59 = vpop.f32.mrf.mxu1 }
 0x25e   :  { %v2063_v61 = vadd.f32 %v2062_v59, %v2022_v58 }
 0x25f   :  { %v2064_v62 = vpop.f32.mrf.mxu1 }
 0x260   :  { %v2065_v63 = vadd.f32 %v2064_v62, %v2024_v60  ;;  %v2069_v0 = vmax.f32 %v2063_v61, 0.0 }
 0x261   :  { %v2066_v1 = vpop.f32.mrf.mxu1 }
 0x262   :  { %v2070_v2 = vmax.f32 %v2065_v63, 0.0  ;;  %v2071_v5 = vpack.c.bf16 %v2069_v0, %v2069_v0 }
 0x263   :  { %v2067_v3 = vpop.f32.mrf.mxu1 }
 0x264   :  { %v2072_v4 = vpack.c.bf16 %v2070_v2, %v2070_v2 }
 0x266   :  { %2240 = vmatprep.mubr.bf16.mxu0 %v2072_v4 }
 0x267   :  { %2241 = vmatmul.mubr.bf16.vlgmr.msra.gmra.mxu0 %v2071_v5 }
 0x268   :  { %2809 = vmatprep.mubr.msk.bf16.mxu0 %vm3236_vm1, %v3235_v44  ;;  %2802 = vmatpush3.bf16.msra.mxu0 %v3230_v6 }
 0x269   :  { %2803 = vmatprep.subr.bf16.mxu0 %v3235_v44 }
 0x26c   :  { %2804 = vmatpush3.bf16.msra.mxu0 %v3231_v7 }
 0x26d   :  { %2805 = vmatprep.subr.bf16.mxu0 %v3235_v44 }
 0x270   :  { %2806 = vmatpush3.bf16.msra.mxu0 %v3232_v22 }
 0x271   :  { %2807 = vmatprep.subr.bf16.mxu0 %v3235_v44 }
 0x274   :  { %2808 = vmatpush3.bf16.msra.mxu0 %v3233_v23 }
 0x327   :  { %v2761_v10 = vpop.f32.mrf.mxu0 }
 0x329   :  { %v2762_v12 = vpop.f32.mrf.mxu0 }
 0x32a   :  { %v2763_v13 = vadd.f32 %v2762_v12, %v2761_v10 }
 0x32b   :  { %v2764_v14 = vpop.f32.mrf.mxu0 }
 0x32c   :  { %v2243_v15 = vadd.f32 %v2763_v13, %v2713_v11 }
 0x32d   :  { %v2765_v17 = vpop.f32.mrf.mxu0 }
 0x32e   :  { %v2248_v18 = vmax.f32 %v2243_v15, 0.0 }
 0x330   :  { %v2249_v21 = vpack.c.bf16 %v2248_v18, %v2248_v18 }
 0x332   :  { %2798 = vmatmul.mubr.bf16.vlgmr.msra.gmra.mxu1 %v2249_v21 }
 0x3f2   :  { %v2355_v25 = vpop.f32.mrf.mxu1 }
 0x3f3   :  { %v2356_v26 = vadd.f32 %v2730_v24, %v2355_v25 }
 0x3f4   :  { %v2799_v27 = vpop.f32.mrf.mxu1 }
 0x3f5   :  { %v2361_v28 = vmax.f32 %v2356_v26, 0.0 }
 0x3f6   :  { %v2358_v29 = vpop.f32.mrf.mxu1 }
 0x3f7   :  { %v2362_v30 = vpack.c.bf16 %v2361_v28, %v2361_v28 }
 0x3f8   :  { %v2800_v9 = vpop.f32.mrf.mxu1 }
 0x3f9   :  { %2810 = vmatmul.mubr.msk.bf16.vlgmr.msra.gmra.mxu0 %vm2402_vm2, %v2362_v30 }
 0x4b9   :  { %v2440_v31 = vpop.f32.mrf.mxu0 }
 0x4ba   :  { %v2441_v32 = vadd.f32 %v2739_v52, %v2440_v31 }
 0x4bb   :  { %v2811_v33 = vpop.f32.mrf.mxu0 }
 0x4bc   :  { %2446 = vst [vmem:[%s4271_s11] sm:$0xff] %v2441_v32 }
 0x4bd   :  { %v2443_v8 = vpop.f32.mrf.mxu0 }
 0x4bf   :  { %v2812_v34 = vpop.f32.mrf.mxu0 }

</bundles_post_ra>
